<compile_context>
chip_gen: v7x
topology: tpu7x:2x2x1
jax: 0.10.0
libtpu: 0.0.40
codegen_flags: <defaults>
</compile_context>

<pallas_src>
import functools
import math

import jax
import jax.numpy as jnp
from jax import lax
from jax.experimental import pallas as pl
from jax.experimental.pallas import tpu as pltpu

_LANE = 128
_HALO_BLOCK = 128        # fixed halo block width; covers every HiFiGAN halo
_PER_TAP_MIN_CIN = 256   # C_in >= this -> per-tap matmuls (skip im2col slab)


# ----------------------------------------------------------------------------
# VMEM budgeting / tile selection
# ----------------------------------------------------------------------------
@functools.lru_cache(maxsize=None)
def _vmem_capacity_bytes():
    try:
        cap = int(pltpu.get_tpu_info().vmem_capacity_bytes)
        if cap >= 32 * 1024 * 1024:
            return cap
    except Exception:
        pass
    return 64 * 1024 * 1024   # conservative fallback (v7x per-core VMEM)


def _vmem_limit_bytes():
    return int(min(_vmem_capacity_bytes() * 3 // 4, 96 * 1024 * 1024))


def _tile_budget_bytes():
    return int(min(max(_vmem_capacity_bytes() // 6, 8 * 1024 * 1024),
                   24 * 1024 * 1024))


def _pick_time_tile(t_out, per_step_bytes, time_tile=None):
    """Returns (t_tile, n_tiles, has_halo)."""
    if time_tile is not None:
        cap = max(_LANE, (int(time_tile) // _LANE) * _LANE)
    else:
        cap = _tile_budget_bytes() // max(int(per_step_bytes), 1)
        cap = max(_LANE, min(2048, (cap // _LANE) * _LANE))
    if t_out <= cap:
        return t_out, 1, False
    return cap, -(-t_out // cap), True


def _stage_time_tile(ch, max_k, use_pairs, max_time_tile):
    """One shared tile for all resblock kernels of an upsample stage so that
    carry tensors line up with the output blocks (no re-pad copies)."""
    if use_pairs:
        per_step = 4 * 14 * ch + 2 * ch * 2 * max_k
    else:
        per_step = 4 * 11 * ch + 2 * ch * max_k
    cap = _tile_budget_bytes() // max(per_step, 1)
    cap = max(_LANE, min(2048, (cap // _LANE) * _LANE))
    if max_time_tile is not None:
        cap = max(_LANE, min(cap, (int(max_time_tile) // _LANE) * _LANE))
    return cap


# ----------------------------------------------------------------------------
# Small host-side helpers
# ----------------------------------------------------------------------------
def _pad_time(x, left, total):
    """[zeros(left), x (clipped), zeros] along the last axis, length `total`."""
    keep = min(x.shape[-1], total - left)
    body = x[..., :keep] if keep < x.shape[-1] else x
    pads = [(0, 0)] * (x.ndim - 1) + [(left, total - left - keep)]
    return jnp.pad(body, pads)


def _fit_time(x, total):
    t = x.shape[-1]
    if t == total:
        return x
    if t > total:
        return x[..., :total]
    return jnp.pad(x, [(0, 0)] * (x.ndim - 1) + [(0, total - t)])


def _x_specs(c_in, t_tile, has_halo, t_x):
    """Main + fixed-width halo block specs (or one full block when untiled)."""
    if not has_halo:
        return [pl.BlockSpec((1, c_in, t_x), lambda bb, tt: (bb, 0, 0))]
    bpt = t_tile // _HALO_BLOCK
    return [
        pl.BlockSpec((1, c_in, t_tile), lambda bb, tt: (bb, 0, tt)),
        pl.BlockSpec((1, c_in, _HALO_BLOCK),
                     lambda bb, tt: (bb, 0, (tt + 1) * bpt)),
    ]


def _full_spec(shape):
    nd = len(shape)
    return pl.BlockSpec(shape, lambda bb, tt: (0,) * nd)


def _compiler_params():
    return pltpu.CompilerParams(
        dimension_semantics=("parallel", "parallel"),
        vmem_limit_bytes=_vmem_limit_bytes())


# ----------------------------------------------------------------------------
# In-kernel helpers
# ----------------------------------------------------------------------------
def _leaky(v, slope):
    return jnp.where(v >= 0, v, slope * v)


def _window(x_main_ref, x_halo_ref):
    main = x_main_ref[0]
    if x_halo_ref is None:
        return main
    return jnp.concatenate([main, x_halo_ref[0]], axis=1)


def _split_refs(refs, has_halo, n_weights, n_carry):
    idx = 0
    x_main = refs[idx]; idx += 1
    x_halo = None
    if has_halo:
        x_halo = refs[idx]; idx += 1
    weights = refs[idx:idx + n_weights]; idx += n_weights
    carry = refs[idx:idx + n_carry]; idx += n_carry
    o_ref = refs[idx]
    return x_main, x_halo, weights, carry, o_ref


def _matmul_taps(w_ref, act_f32, k, dilation, length):
    """Sum_k W_k @ act[:, k*d : k*d + length]; bf16 MXU operands, f32 acc.

    w_ref is either a (C_out, K*C_in) im2col weight (2-D) or a (K, C_out, C_in)
    per-tap weight (3-D)."""
    if len(w_ref.shape) == 2:
        if k == 1:
            slab = act_f32[:, :length]
        else:
            slab = jnp.concatenate(
                [act_f32[:, i * dilation:i * dilation + length] for i in range(k)],
                axis=0)
        return jnp.dot(w_ref[...], slab.astype(jnp.bfloat16),
                       preferred_element_type=jnp.float32)
    acc = None
    for i in range(k):
        part = jnp.dot(
            w_ref[i],
            act_f32[:, i * dilation:i * dilation + length].astype(jnp.bfloat16),
            preferred_element_type=jnp.float32)
        acc = part if acc is None else acc + part
    return acc


# ----------------------------------------------------------------------------
# Kernel 1: single fused Conv1d (scale -> LeakyReLU -> conv -> +res -> tanh)
# ----------------------------------------------------------------------------
def _conv1d_kernel(*refs, K, dilation, t_tile, t_out, t_out_pad, pad_l,
                   in_scale, in_slope, out_act, add_x_res, n_carry, has_halo):
    x_main, x_halo, (w_ref, b_ref), carry_refs, o_ref = _split_refs(
        refs, has_halo, 2, n_carry)

    t0 = pl.program_id(1) * t_tile
    win = _window(x_main, x_halo).astype(jnp.float32)

    act = win
    if in_scale is not None:
        act = act * in_scale
    if in_slope is not None:
        act = _leaky(act, in_slope)

    acc = _matmul_taps(w_ref, act, K, dilation, t_tile)
    acc = acc + b_ref[...]
    if add_x_res:
        acc = acc + win[:, pad_l:pad_l + t_tile]
    for c_ref in carry_refs:
        acc = acc + c_ref[0].astype(jnp.float32)
    if out_act == "tanh":
        acc = jnp.tanh(acc)
    if t_out_pad > t_out:
        col = lax.broadcasted_iota(jnp.int32, (1, t_tile), 1) + t0
        acc = jnp.where(col < t_out, acc, 0.0)
    o_ref[0] = acc.astype(o_ref.dtype)


def pallas_conv1d(x, wp, b2, *, kernel_size, dilation=1, padding=None,
                  t_in=None, in_scale=None, in_slope=None, out_act=None,
                  add_x_res=False, carry=(), time_tile=None):
    """Fused dilated Conv1d (stride 1).  Returns (y, t_out); y's time length is
    >= t_out and exactly zero beyond it."""
    B, C_in, _ = x.shape
    C_out = b2.shape[0]
    K = kernel_size
    if t_in is None:
        t_in = x.shape[-1]
    halo = dilation * (K - 1)
    if padding is None:
        padding = (halo // 2, halo // 2)
    pad_l, pad_r = padding
    t_out = t_in + pad_l + pad_r - halo
    assert t_out > 0 and halo <= _HALO_BLOCK
    if add_x_res:
        assert C_in == C_out and pad_l == pad_r == halo // 2

    im2col = len(wp.shape) == 2
    per_step = (4 * (4 * C_in + 6 * C_out + (C_in if add_x_res else 0)
                     + 2 * C_out * len(carry))
                + 2 * C_in * (K if im2col else 1))
    t_tile, n_t, has_halo = _pick_time_tile(t_out, per_step, time_tile)
    t_out_pad = t_tile * n_t
    t_x = t_out_pad + (_HALO_BLOCK if has_halo else halo)
    x_pad = _pad_time(x, pad_l, t_x)
    carry = tuple(_fit_time(c, t_out_pad) for c in carry)

    kernel = functools.partial(
        _conv1d_kernel, K=K, dilation=dilation, t_tile=t_tile, t_out=t_out,
        t_out_pad=t_out_pad, pad_l=pad_l, in_scale=in_scale, in_slope=in_slope,
        out_act=out_act, add_x_res=add_x_res, n_carry=len(carry),
        has_halo=has_halo)

    in_specs = _x_specs(C_in, t_tile, has_halo, t_x)
    in_specs += [_full_spec(wp.shape), _full_spec(b2.shape)]
    in_specs += [pl.BlockSpec((1, C_out, t_tile), lambda bb, tt: (bb, 0, tt))
                 for _ in carry]
    x_args = (x_pad, x_pad) if has_halo else (x_pad,)

    y = pl.pallas_call(
        kernel,
        out_shape=jax.ShapeDtypeStruct((B, C_out, t_out_pad), x.dtype),
        grid=(B, n_t),
        in_specs=in_specs,
        out_specs=pl.BlockSpec((1, C_out, t_tile), lambda bb, tt: (bb, 0, tt)),
        compiler_params=_compiler_params(),
    )(*x_args, wp, b2, *carry)
    return y, t_out


# ----------------------------------------------------------------------------
# Kernel 2: fused ResidualBlock pair  (conv1 -> conv2 -> +x (+carry))
# ----------------------------------------------------------------------------
def _pair_kernel(*refs, k1, d1, k2, t_tile, t_out, t_out_pad, slope, n_carry,
                 has_halo):
    x_main, x_halo, (w1, b1, w2, b2), carry_refs, o_ref = _split_refs(
        refs, has_halo, 4, n_carry)

    halo1 = d1 * (k1 - 1)
    halo2 = k2 - 1
    pad2 = halo2 // 2
    p_l = (halo1 + halo2) // 2

    t0 = pl.program_id(1) * t_tile
    win = _window(x_main, x_halo).astype(jnp.float32)

    # conv1 over the extended range needed by conv2 (intermediate stays in VMEM)
    a1 = _leaky(win, slope)
    l1 = t_tile + halo2
    xt = _matmul_taps(w1, a1, k1, d1, l1) + b1[...]
    # PyTorch's conv2 zero-pads xt outside [0, t_out): enforce that here.
    pos = lax.broadcasted_iota(jnp.int32, (1, l1), 1) + (t0 - pad2)
    xt = jnp.where((pos >= 0) & (pos < t_out), xt, 0.0)

    a2 = _leaky(xt, slope)
    acc = _matmul_taps(w2, a2, k2, 1, t_tile) + b2[...]
    acc = acc + win[:, p_l:p_l + t_tile]               # residual: + x (from window)
    for c_ref in carry_refs:
        acc = acc + c_ref[0].astype(jnp.float32)
    if t_out_pad > t_out:
        col = lax.broadcasted_iota(jnp.int32, (1, t_tile), 1) + t0
        acc = jnp.where(col < t_out, acc, 0.0)
    o_ref[0] = acc.astype(o_ref.dtype)


def pallas_resblock_pair(x, w1p, b1, w2p, b2, *, k1, d1, k2, slope, t_in=None,
                         carry=(), time_tile=None):
    """Fused convs1[i] -> convs2[i] -> (+ x) (+ carry) of a ResidualBlock."""
    B, C, _ = x.shape
    if t_in is None:
        t_in = x.shape[-1]
    halo1 = d1 * (k1 - 1)
    halo2 = k2 - 1
    halo_t = halo1 + halo2
    assert halo_t <= _HALO_BLOCK
    t_out = t_in

    im1 = len(w1p.shape) == 2
    im2 = len(w2p.shape) == 2
    per_step = (4 * (12 * C + 2 * C * len(carry))
                + 2 * C * ((k1 if im1 else 1) + (k2 if im2 else 1)))
    t_tile, n_t, has_halo = _pick_time_tile(t_out, per_step, time_tile)
    t_out_pad = t_tile * n_t
    t_x = t_out_pad + (_HALO_BLOCK if has_halo else halo_t)
    x_pad = _pad_time(x, halo_t // 2, t_x)
    carry = tuple(_fit_time(c, t_out_pad) for c in carry)

    kernel = functools.partial(
        _pair_kernel, k1=k1, d1=d1, k2=k2, t_tile=t_tile, t_out=t_out,
        t_out_pad=t_out_pad, slope=slope, n_carry=len(carry), has_halo=has_halo)

    in_specs = _x_specs(C, t_tile, has_halo, t_x)
    in_specs += [_full_spec(w1p.shape), _full_spec(b1.shape),
                 _full_spec(w2p.shape), _full_spec(b2.shape)]
    in_specs += [pl.BlockSpec((1, C, t_tile), lambda bb, tt: (bb, 0, tt))
                 for _ in carry]
    x_args = (x_pad, x_pad) if has_halo else (x_pad,)

    y = pl.pallas_call(
        kernel,
        out_shape=jax.ShapeDtypeStruct((B, C, t_out_pad), x.dtype),
        grid=(B, n_t),
        in_specs=in_specs,
        out_specs=pl.BlockSpec((1, C, t_tile), lambda bb, tt: (bb, 0, tt)),
        compiler_params=_compiler_params(),
    )(*x_args, w1p, b1, w2p, b2, *carry)
    return y, t_out


# ----------------------------------------------------------------------------
# Kernel 3: fused polyphase ConvTranspose1d (all phases in one kernel)
# ----------------------------------------------------------------------------
def _phase_offsets(scale):
    s = scale
    K = 2 * s
    padding = s // 2 + s % 2
    pad_l_eq = K - 1 - padding
    offs, taps = [], []
    for r in range(s):
        k_a = (pad_l_eq - r) % s
        m_a = -((pad_l_eq - r) // s)          # in {-1, 0}
        offs.append(1 + m_a)                  # base offset into the window
        taps.append((k_a, k_a + s))
    return tuple(offs), tuple(taps)


def _upsample_kernel(*refs, scale, offs, t_tile, t_in, t_in_pad, in_scale,
                     slope, has_halo):
    x_main, x_halo, (w_ref, b_ref), _, o_ref = _split_refs(refs, has_halo, 2, 0)

    q0 = pl.program_id(1) * t_tile
    win = _window(x_main, x_halo).astype(jnp.float32)
    if in_scale is not None:
        win = win * in_scale
    act = _leaky(win, slope)
    b = b_ref[...]
    mask_col = None
    if t_in_pad > t_in:
        mask_col = lax.broadcasted_iota(jnp.int32, (1, t_tile), 1) + q0
    for r in range(scale):
        o = offs[r]
        acc = jnp.dot(w_ref[r, 0], act[:, o:o + t_tile].astype(jnp.bfloat16),
                      preferred_element_type=jnp.float32)
        acc = acc + jnp.dot(w_ref[r, 1],
                            act[:, o + 1:o + 1 + t_tile].astype(jnp.bfloat16),
                            preferred_element_type=jnp.float32)
        acc = acc + b
        if mask_col is not None:
            acc = jnp.where(mask_col < t_in, acc, 0.0)
        o_ref[0, r] = acc.astype(o_ref.dtype)


def pallas_upsample(x, wp, b2, *, scale, slope, t_in=None, in_scale=None,
                    time_tile=None):
    """LeakyReLU -> ConvTranspose1d (kernel = 2*scale), fused polyphase."""
    B, C_in, _ = x.shape
    s = scale
    C_out = b2.shape[0]
    if t_in is None:
        t_in = x.shape[-1]
    offs, _ = _phase_offsets(s)

    per_step = 4 * (4 * C_in + (2 + 2 * s) * C_out) + 2 * C_in
    t_tile, n_t, has_halo = _pick_time_tile(t_in, per_step, time_tile)
    t_in_pad = t_tile * n_t
    t_x = t_in_pad + (_HALO_BLOCK if has_halo else 2)
    x_pad = _pad_time(x, 1, t_x)

    kernel = functools.partial(
        _upsample_kernel, scale=s, offs=offs, t_tile=t_tile, t_in=t_in,
        t_in_pad=t_in_pad, in_scale=in_scale, slope=slope, has_halo=has_halo)

    in_specs = _x_specs(C_in, t_tile, has_halo, t_x)
    in_specs += [_full_spec(wp.shape), _full_spec(b2.shape)]
    x_args = (x_pad, x_pad) if has_halo else (x_pad,)

    y = pl.pallas_call(
        kernel,
        out_shape=jax.ShapeDtypeStruct((B, s, C_out, t_in_pad), x.dtype),
        grid=(B, n_t),
        in_specs=in_specs,
        out_specs=pl.BlockSpec((1, s, C_out, t_tile),
                               lambda bb, tt: (bb, 0, 0, tt)),
        compiler_params=_compiler_params(),
    )(*x_args, wp, b2)
    # Phase interleave: (B, s, C_out, T) -> (B, C_out, T*s).
    # TODO(synk): do this in-kernel with lane-strided stores to save a pass.
    y = jnp.transpose(y, (0, 2, 3, 1)).reshape(B, C_out, t_in_pad * s)
    return y, t_in * s


# ----------------------------------------------------------------------------
# Parameter packing (done once, outside the jitted forward)
# ----------------------------------------------------------------------------
def _pack_conv(w, b):
    c_out, c_in, k = w.shape
    if c_in >= _PER_TAP_MIN_CIN:
        wp = jnp.transpose(w, (2, 0, 1)).astype(jnp.bfloat16)          # (K,Co,Ci)
    else:
        wp = jnp.transpose(w, (0, 2, 1)).reshape(c_out, k * c_in).astype(
            jnp.bfloat16)                                              # (Co,K*Ci)
    return {"w": wp, "b": b.reshape(c_out, 1).astype(jnp.float32)}


def _pack_upsample(w_pt, b, scale):
    c_in, c_out, k = w_pt.shape
    assert k == 2 * scale, "HiFiGAN requires upsample kernel size == 2 * scale"
    _, taps = _phase_offsets(scale)
    rows = []
    for r in range(scale):
        wr = jnp.stack([w_pt[:, :, k - 1 - t].T for t in taps[r]], axis=0)
        rows.append(wr)                                                # (2,Co,Ci)
    wp = jnp.stack(rows, axis=0).astype(jnp.bfloat16)                  # (s,2,Co,Ci)
    return {"w": wp, "b": b.reshape(c_out, 1).astype(jnp.float32)}


def pack_params(params, cfg):
    packed = {
        "input_conv": _pack_conv(params["input_conv"]["w"],
                                 params["input_conv"]["b"]),
        "output_conv": _pack_conv(params["output_conv"]["w"],
                                  params["output_conv"]["b"]),
        "upsamples": [
            _pack_upsample(u["w"], u["b"], s)
            for u, s in zip(params["upsamples"], cfg["upsample_scales"])],
        "blocks": [],
    }
    for blk in params["blocks"]:
        packed["blocks"].append({
            "convs1": [_pack_conv(c["w"], c["b"]) for c in blk["convs1"]],
            "convs2": [_pack_conv(c["w"], c["b"]) for c in blk["convs2"]],
        })
    return packed


# ----------------------------------------------------------------------------
# HiFiGAN forward (composition of the Pallas kernels)
# ----------------------------------------------------------------------------
def residual_block(x, t_len, blk, kernel_size, dilations, use_additional_convs,
                   slope, carry=None, time_tile=None):
    """Returns block(x) + carry; carry is fused into the block's last kernel."""
    carry_t = () if carry is None else (carry,)
    for idx, d in enumerate(dilations):
        extra = carry_t if idx == len(dilations) - 1 else ()
        if use_additional_convs:
            x, _ = pallas_resblock_pair(
                x, blk["convs1"][idx]["w"], blk["convs1"][idx]["b"],
                blk["convs2"][idx]["w"], blk["convs2"][idx]["b"],
                k1=kernel_size, d1=d, k2=kernel_size, slope=slope,
                t_in=t_len, carry=extra, time_tile=time_tile)
        else:
            x, _ = pallas_conv1d(
                x, blk["convs1"][idx]["w"], blk["convs1"][idx]["b"],
                kernel_size=kernel_size, dilation=d, in_slope=slope,
                add_x_res=True, carry=extra, t_in=t_len, time_tile=time_tile)
    return x


def hifigan_forward(params, c, cfg, max_time_tile=None):
    """c: (B, in_channels, T); returns (B, out_channels, T * prod(scales))."""
    slope = cfg["leaky_slope"]
    ks = cfg["kernel_size"]
    num_blocks = len(cfg["resblock_kernel_sizes"])

    x, t_len = pallas_conv1d(c, params["input_conv"]["w"],
                             params["input_conv"]["b"], kernel_size=ks,
                             time_tile=max_time_tile)
    # TODO(synk): global conditioning (g / global_conv) not wired; the default
    # global_channels=-1 in the reference module disables it.

    in_scale = None           # pending 1/num_blocks fold from previous stage
    for i, scale in enumerate(cfg["upsample_scales"]):
        up = params["upsamples"][i]
        x, t_len = pallas_upsample(x, up["w"], up["b"], scale=scale,
                                   slope=slope, t_in=t_len, in_scale=in_scale,
                                   time_tile=max_time_tile)
        ch = cfg["channels"] // 2 ** (i + 1)
        stage_tile = _stage_time_tile(ch, max(cfg["resblock_kernel_sizes"]),
                                      cfg["use_additional_convs"],
                                      max_time_tile)
        cs = None
        for j in range(num_blocks):
            blk = params["blocks"][i * num_blocks + j]
            cs = residual_block(x, t_len, blk, cfg["resblock_kernel_sizes"][j],
                                cfg["resblock_dilations"][j],
                                cfg["use_additional_convs"], slope, carry=cs,
                                time_tile=stage_tile)
        x = cs                          # un-normalized sum of block outputs
        in_scale = 1.0 / num_blocks     # fold 1/num_blocks into the next layer

    x, t_len = pallas_conv1d(x, params["output_conv"]["w"],
                             params["output_conv"]["b"], kernel_size=ks,
                             in_slope=0.01, in_scale=in_scale, out_act="tanh",
                             t_in=t_len, time_tile=max_time_tile)
    return x[:, :, :t_len]


# ----------------------------------------------------------------------------
# Pure-JAX references (only used by the self-checks in __main__)
# ----------------------------------------------------------------------------
def _ref_conv1d(x, w, b, dilation, padding, in_slope=None, in_scale=None):
    xx = x
    if in_scale is not None:
        xx = xx * in_scale
    if in_slope is not None:
        xx = jnp.where(xx >= 0, xx, in_slope * xx)
    y = lax.conv_general_dilated(
        xx, w, window_strides=(1,), padding=[tuple(padding)],
        rhs_dilation=(dilation,), dimension_numbers=("NCH", "OIH", "NCH"))
    return y + b[None, :, None]


def _ref_conv_transpose1d(x, w_pt, b, stride, padding, output_padding, in_slope,
                          in_scale=None):
    xx = x if in_scale is None else x * in_scale
    xx = jnp.where(xx >= 0, xx, in_slope * xx)
    K = w_pt.shape[-1]
    w_eq = jnp.flip(jnp.transpose(w_pt, (1, 0, 2)), axis=-1)   # (C_out, C_in, K)
    y = lax.conv_general_dilated(
        xx, w_eq, window_strides=(1,),
        padding=[(K - 1 - padding, K - 1 - padding + output_padding)],
        lhs_dilation=(stride,), dimension_numbers=("NCH", "OIH", "NCH"))
    return y + b[None, :, None]


def hifigan_forward_ref(params, c, cfg):
    slope = cfg["leaky_slope"]
    ks = cfg["kernel_size"]
    pad = (ks - 1) // 2
    nb = len(cfg["resblock_kernel_sizes"])
    x = _ref_conv1d(c, params["input_conv"]["w"], params["input_conv"]["b"],
                    1, (pad, pad))
    for i, s in enumerate(cfg["upsample_scales"]):
        up = params["upsamples"][i]
        x = _ref_conv_transpose1d(x, up["w"], up["b"], s, s // 2 + s % 2,
                                  s % 2, slope)
        cs = 0.0
        for j in range(nb):
            blk = params["blocks"][i * nb + j]
            rk = cfg["resblock_kernel_sizes"][j]
            xb = x
            for idx, d in enumerate(cfg["resblock_dilations"][j]):
                p1 = (rk - 1) // 2 * d
                xt = _ref_conv1d(xb, blk["convs1"][idx]["w"],
                                 blk["convs1"][idx]["b"], d, (p1, p1),
                                 in_slope=slope)
                if cfg["use_additional_convs"]:
                    p2 = (rk - 1) // 2
                    xt = _ref_conv1d(xt, blk["convs2"][idx]["w"],
                                     blk["convs2"][idx]["b"], 1, (p2, p2),
                                     in_slope=slope)
                xb = xt + xb
            cs = cs + xb
        x = cs / nb
    x = _ref_conv1d(x, params["output_conv"]["w"], params["output_conv"]["b"],
                    1, (pad, pad), in_slope=0.01)
    return jnp.tanh(x)


# ----------------------------------------------------------------------------
# Deterministic parameter init (weights ~ N(0, 0.01), as in reset_parameters).
# Weight norm is a pure reparameterization with identical forward math.
# ----------------------------------------------------------------------------
def _normal(key, shape, std=0.01):
    return std * jax.random.normal(key, shape, dtype=jnp.float32)


def init_params(key, cfg):
    keys = iter(jax.random.split(key, 512))
    ks, ch = cfg["kernel_size"], cfg["channels"]
    p = {
        "input_conv": {"w": _normal(next(keys), (ch, cfg["in_channels"], ks)),
                       "b": _normal(next(keys), (ch,))},
        "upsamples": [],
        "blocks": [],
    }
    for i, uk in enumerate(cfg["upsample_kernel_sizes"]):
        cin = ch // 2 ** i
        cout = ch // 2 ** (i + 1)
        p["upsamples"].append({
            "w": _normal(next(keys), (cin, cout, uk)),    # PyTorch CT1d layout
            "b": _normal(next(keys), (cout,)),
        })
        for rk, dils in zip(cfg["resblock_kernel_sizes"],
                            cfg["resblock_dilations"]):
            blk = {"convs1": [], "convs2": []}
            for _ in dils:
                blk["convs1"].append({"w": _normal(next(keys), (cout, cout, rk)),
                                      "b": _normal(next(keys), (cout,))})
                if cfg["use_additional_convs"]:
                    blk["convs2"].append({"w": _normal(next(keys),
                                                       (cout, cout, rk)),
                                          "b": _normal(next(keys), (cout,))})
            p["blocks"].append(blk)
    c_last = ch // 2 ** len(cfg["upsample_scales"])
    p["output_conv"] = {
        "w": _normal(next(keys), (cfg["out_channels"], c_last, ks)),
        "b": _normal(next(keys), (cfg["out_channels"],)),
    }
    return p


# ----------------------------------------------------------------------------
if __name__ == "__main__":
    key = jax.random.PRNGKey(0)
    k = jax.random.split(key, 24)
    TOL = dict(atol=1e-2, rtol=1e-2)

    # ---- fused ResidualBlock pair (conv1 -> conv2 -> +x +carry) -------------
    C, T = 24, 300
    x = jax.random.normal(k[0], (2, C, T), jnp.float32)
    carry = jax.random.normal(k[1], (2, C, T), jnp.float32)
    w1 = 0.05 * jax.random.normal(k[2], (C, C, 5), jnp.float32)
    b1 = 0.05 * jax.random.normal(k[3], (C,), jnp.float32)
    w2 = 0.05 * jax.random.normal(k[4], (C, C, 5), jnp.float32)
    b2 = 0.05 * jax.random.normal(k[5], (C,), jnp.float32)
    d = 3
    p1 = (5 - 1) // 2 * d
    xt_ref = _ref_conv1d(x, w1, b1, d, (p1, p1), in_slope=0.1)
    y_ref = _ref_conv1d(xt_ref, w2, b2, 1, (2, 2), in_slope=0.1) + x + carry
    pw1, pw2 = _pack_conv(w1, b1), _pack_conv(w2, b2)
    for tt in (None, 128):
        y, t_out = pallas_resblock_pair(x, pw1["w"], pw1["b"], pw2["w"],
                                        pw2["b"], k1=5, d1=d, k2=5, slope=0.1,
                                        carry=(carry,), time_tile=tt)
        assert t_out == T
        assert bool(jnp.allclose(y[:, :, :T], y_ref, **TOL))
        if y.shape[-1] > T:
            assert float(jnp.max(jnp.abs(y[:, :, T:]))) == 0.0

    # ---- single conv with x-residual + carry (use_additional_convs=False) ---
    x2 = jax.random.normal(k[6], (2, 16, T), jnp.float32)
    carry2 = jax.random.normal(k[7], (2, 16, T), jnp.float32)
    ws = 0.05 * jax.random.normal(k[8], (16, 16, 3), jnp.float32)
    bs = 0.05 * jax.random.normal(k[9], (16,), jnp.float32)
    y2_ref = _ref_conv1d(x2, ws, bs, 2, (2, 2), in_slope=0.1) + x2 + carry2
    ps = _pack_conv(ws, bs)
    y2, _ = pallas_conv1d(x2, ps["w"], ps["b"], kernel_size=3, dilation=2,
                          in_slope=0.1, add_x_res=True, carry=(carry2,),
                          time_tile=128)
    assert bool(jnp.allclose(y2[:, :, :T], y2_ref, **TOL))

    # ---- output-conv style (scale -> LeakyReLU(0.01) -> conv -> tanh) -------
    w3 = 0.05 * jax.random.normal(k[10], (1, C, 7), jnp.float32)
    b3 = 0.05 * jax.random.normal(k[11], (1,), jnp.float32)
    y3_ref = jnp.tanh(_ref_conv1d(x, w3, b3, 1, (3, 3), in_slope=0.01,
                                  in_scale=0.5))
    p3 = _pack_conv(w3, b3)
    y3, _ = pallas_conv1d(x, p3["w"], p3["b"], kernel_size=7, in_slope=0.01,
                          in_scale=0.5, out_act="tanh", time_tile=128)
    assert bool(jnp.allclose(y3[:, :, :T], y3_ref, **TOL))

    # ---- per-tap (large C_in) matmul path ------------------------------------
    xc = jax.random.normal(k[17], (1, 256, 150), jnp.float32)
    wc = 0.02 * jax.random.normal(k[18], (256, 256, 3), jnp.float32)
    bc = 0.02 * jax.random.normal(k[19], (256,), jnp.float32)
    pc = _pack_conv(wc, bc)
    assert pc["w"].ndim == 3
    yc_ref = _ref_conv1d(xc, wc, bc, 1, (1, 1), in_slope=0.1)
    yc, _ = pallas_conv1d(xc, pc["w"], pc["b"], kernel_size=3, in_slope=0.1,
                          time_tile=128)
    assert bool(jnp.allclose(yc[:, :, :150], yc_ref, **TOL))

    # ---- fused polyphase ConvTranspose1d -------------------------------------
    xu = jax.random.normal(k[12], (1, 16, 200), jnp.float32)
    wu = 0.05 * jax.random.normal(k[13], (16, 8, 4), jnp.float32)
    bu = 0.05 * jax.random.normal(k[14], (8,), jnp.float32)
    zu_ref = _ref_conv_transpose1d(xu, wu, bu, 2, 1, 0, 0.1)
    pu = _pack_upsample(wu, bu, 2)
    for tt in (None, 128):
        zu, t_up = pallas_upsample(xu, pu["w"], pu["b"], scale=2, slope=0.1,
                                   time_tile=tt)
        assert t_up == 400
        assert bool(jnp.allclose(zu[:, :, :400], zu_ref, **TOL))
        if zu.shape[-1] > 400:
            assert float(jnp.max(jnp.abs(zu[:, :, 400:]))) == 0.0
    xu8 = jax.random.normal(k[15], (1, 16, 40), jnp.float32)
    wu8 = 0.05 * jax.random.normal(k[16], (16, 8, 16), jnp.float32)
    zu8_ref = _ref_conv_transpose1d(xu8, wu8, bu, 8, 4, 0, 0.1)
    pu8 = _pack_upsample(wu8, bu, 8)
    zu8, t8 = pallas_upsample(xu8, pu8["w"], pu8["b"], scale=8, slope=0.1)
    assert t8 == 320
    assert bool(jnp.allclose(zu8[:, :, :320], zu8_ref, **TOL))

    # ---- full HiFiGAN forward (small but structurally faithful config) ------
    cfg = dict(
        in_channels=8,
        out_channels=1,
        channels=32,
        kernel_size=7,
        upsample_scales=[2, 2],
        upsample_kernel_sizes=[4, 4],            # == 2 * upsample_scales[i]
        resblock_kernel_sizes=[3, 5],
        resblock_dilations=[[1, 3], [1, 3]],
        use_additional_convs=True,
        leaky_slope=0.1,
    )
    raw_params = init_params(k[20], cfg)
    packed_params = pack_params(raw_params, cfg)   # pre-pack once, outside jit

    B, T_in = 2, 80
    c = jax.random.normal(k[21], (B, cfg["in_channels"], T_in), jnp.float32)
    up = math.prod(cfg["upsample_scales"])
    y_full_ref = hifigan_forward_ref(raw_params, c, cfg)

    for mt in (None, 128):                          # heuristic tiles + forced tiling
        fwd = jax.jit(functools.partial(hifigan_forward, cfg=cfg,
                                        max_time_tile=mt))
        y_full = jax.block_until_ready(fwd(packed_params, c))
        assert y_full.shape == (B, cfg["out_channels"], T_in * up), y_full.shape
        assert bool(jnp.all(jnp.isfinite(y_full)))
        rel = jnp.linalg.norm(y_full - y_full_ref) / (
            jnp.linalg.norm(y_full_ref) + 1e-12)
        assert float(rel) < 5e-2, float(rel)

    print("KERNEL_OK")
</pallas_src>

<mosaic_0001>
module attributes {stable_mosaic.version = 11 : i64} {
  func.func @_pair_kernel(%arg0: i32, %arg1: i32, %arg2: memref<1x24x316xf32, #tpu.memory_space<vmem>>, %arg3: memref<24x120xbf16, #tpu.memory_space<vmem>>, %arg4: memref<24x1xf32, #tpu.memory_space<vmem>>, %arg5: memref<24x120xbf16, #tpu.memory_space<vmem>>, %arg6: memref<24x1xf32, #tpu.memory_space<vmem>>, %arg7: memref<1x24x300xf32, #tpu.memory_space<vmem>>, %arg8: memref<1x24x300xf32, #tpu.memory_space<vmem>>) attributes {dimension_semantics = [#tpu.dimension_semantics<parallel>, #tpu.dimension_semantics<parallel>], iteration_bounds = array<i64: 2, 1>, scalar_prefetch = 0 : i64, scratch_operands = 0 : i64, tpu.core_type = #tpu.core_type<tc>, window_params = [{transform_indices = @transform_0, window_bounds = array<i64: 1, 24, 316>}, {pipeline_mode = #tpu.pipeline_mode<synchronous>, transform_indices = @transform_1, window_bounds = array<i64: 24, 120>}, {pipeline_mode = #tpu.pipeline_mode<synchronous>, transform_indices = @transform_2, window_bounds = array<i64: 24, 1>}, {pipeline_mode = #tpu.pipeline_mode<synchronous>, transform_indices = @transform_3, window_bounds = array<i64: 24, 120>}, {pipeline_mode = #tpu.pipeline_mode<synchronous>, transform_indices = @transform_4, window_bounds = array<i64: 24, 1>}, {transform_indices = @transform_5, window_bounds = array<i64: 1, 24, 300>}, {transform_indices = @transform_6, window_bounds = array<i64: 1, 24, 300>}]} {
    %c300_i32 = arith.constant 300 : i32
    %0 = arith.muli %arg1, %c300_i32 : i32
    %c0 = arith.constant 0 : index
    %c0_0 = arith.constant 0 : index
    %c0_1 = arith.constant 0 : index
    %1 = vector.load %arg2[%c0, %c0_0, %c0_1] : memref<1x24x316xf32, #tpu.memory_space<vmem>>, vector<1x24x316xf32>
    %2 = vector.shape_cast %1 : vector<1x24x316xf32> to vector<24x316xf32>
    %cst = arith.constant 0.000000e+00 : f32
    %3 = vector.broadcast %cst : f32 to vector<24x316xf32>
    %4 = arith.cmpf oge, %2, %3 : vector<24x316xf32>
    %cst_2 = arith.constant 1.000000e-01 : f32
    %5 = vector.broadcast %cst_2 : f32 to vector<24x316xf32>
    %6 = arith.mulf %5, %2 : vector<24x316xf32>
    %7 = arith.select %4, %2, %6 : vector<24x316xi1>, vector<24x316xf32>
    %8 = vector.extract_strided_slice %7 {offsets = [0, 0], sizes = [24, 304], strides = [1, 1]} : vector<24x316xf32> to vector<24x304xf32>
    %9 = vector.extract_strided_slice %7 {offsets = [0, 3], sizes = [24, 304], strides = [1, 1]} : vector<24x316xf32> to vector<24x304xf32>
    %10 = vector.extract_strided_slice %7 {offsets = [0, 6], sizes = [24, 304], strides = [1, 1]} : vector<24x316xf32> to vector<24x304xf32>
    %11 = vector.extract_strided_slice %7 {offsets = [0, 9], sizes = [24, 304], strides = [1, 1]} : vector<24x316xf32> to vector<24x304xf32>
    %12 = vector.extract_strided_slice %7 {offsets = [0, 12], sizes = [24, 304], strides = [1, 1]} : vector<24x316xf32> to vector<24x304xf32>
    %13 = tpu.concatenate %8, %9, %10, %11, %12 in 0 : vector<24x304xf32>, vector<24x304xf32>, vector<24x304xf32>, vector<24x304xf32>, vector<24x304xf32> -> vector<120x304xf32>
    %c0_3 = arith.constant 0 : index
    %c0_4 = arith.constant 0 : index
    %14 = vector.load %arg3[%c0_3, %c0_4] : memref<24x120xbf16, #tpu.memory_space<vmem>>, vector<24x120xbf16>
    %15 = arith.truncf %13 : vector<120x304xf32> to vector<120x304xbf16>
    %cst_5 = arith.constant dense<0.000000e+00> : vector<24x304xf32>
    %16 = tpu.matmul %14, %15, %cst_5 {dimension_numbers = #tpu.dot_dimension_numbers<[1], [0], [0], [1], [0, 0, 1, 1], [], []>} : vector<24x120xbf16>, vector<120x304xbf16>, vector<24x304xf32> -> vector<24x304xf32>
    %c0_6 = arith.constant 0 : index
    %c0_7 = arith.constant 0 : index
    %17 = vector.load %arg4[%c0_6, %c0_7] : memref<24x1xf32, #tpu.memory_space<vmem>>, vector<24x1xf32>
    %18 = vector.broadcast %17 : vector<24x1xf32> to vector<24x304xf32>
    %19 = arith.addf %16, %18 : vector<24x304xf32>
    %20 = tpu.iota {dimensions = array<i32: 1>} : vector<1x304xi32>
    %c2_i32 = arith.constant 2 : i32
    %21 = arith.subi %0, %c2_i32 : i32
    %22 = vector.broadcast %21 : i32 to vector<1x304xi32>
    %23 = arith.addi %20, %22 : vector<1x304xi32>
    %c0_i32 = arith.constant 0 : i32
    %24 = vector.broadcast %c0_i32 : i32 to vector<1x304xi32>
    %25 = arith.cmpi sge, %23, %24 : vector<1x304xi32>
    %c300_i32_8 = arith.constant 300 : i32
    %26 = vector.broadcast %c300_i32_8 : i32 to vector<1x304xi32>
    %27 = arith.cmpi slt, %23, %26 : vector<1x304xi32>
    %28 = arith.andi %25, %27 : vector<1x304xi1>
    %cst_9 = arith.constant 0.000000e+00 : f32
    %29 = vector.shape_cast %28 : vector<1x304xi1> to vector<1x304xi1>
    %30 = vector.broadcast %29 : vector<1x304xi1> to vector<24x304xi1>
    %31 = vector.broadcast %cst_9 : f32 to vector<24x304xf32>
    %32 = arith.select %30, %19, %31 : vector<24x304xi1>, vector<24x304xf32>
    %cst_10 = arith.constant 0.000000e+00 : f32
    %33 = vector.broadcast %cst_10 : f32 to vector<24x304xf32>
    %34 = arith.cmpf oge, %32, %33 : vector<24x304xf32>
    %cst_11 = arith.constant 1.000000e-01 : f32
    %35 = vector.broadcast %cst_11 : f32 to vector<24x304xf32>
    %36 = arith.mulf %35, %32 : vector<24x304xf32>
    %37 = arith.select %34, %32, %36 : vector<24x304xi1>, vector<24x304xf32>
    %38 = vector.extract_strided_slice %37 {offsets = [0, 0], sizes = [24, 300], strides = [1, 1]} : vector<24x304xf32> to vector<24x300xf32>
    %39 = vector.extract_strided_slice %37 {offsets = [0, 1], sizes = [24, 300], strides = [1, 1]} : vector<24x304xf32> to vector<24x300xf32>
    %40 = vector.extract_strided_slice %37 {offsets = [0, 2], sizes = [24, 300], strides = [1, 1]} : vector<24x304xf32> to vector<24x300xf32>
    %41 = vector.extract_strided_slice %37 {offsets = [0, 3], sizes = [24, 300], strides = [1, 1]} : vector<24x304xf32> to vector<24x300xf32>
    %42 = vector.extract_strided_slice %37 {offsets = [0, 4], sizes = [24, 300], strides = [1, 1]} : vector<24x304xf32> to vector<24x300xf32>
    %43 = tpu.concatenate %38, %39, %40, %41, %42 in 0 : vector<24x300xf32>, vector<24x300xf32>, vector<24x300xf32>, vector<24x300xf32>, vector<24x300xf32> -> vector<120x300xf32>
    %c0_12 = arith.constant 0 : index
    %c0_13 = arith.constant 0 : index
    %44 = vector.load %arg5[%c0_12, %c0_13] : memref<24x120xbf16, #tpu.memory_space<vmem>>, vector<24x120xbf16>
    %45 = arith.truncf %43 : vector<120x300xf32> to vector<120x300xbf16>
    %cst_14 = arith.constant dense<0.000000e+00> : vector<24x300xf32>
    %46 = tpu.matmul %44, %45, %cst_14 {dimension_numbers = #tpu.dot_dimension_numbers<[1], [0], [0], [1], [0, 0, 1, 1], [], []>} : vector<24x120xbf16>, vector<120x300xbf16>, vector<24x300xf32> -> vector<24x300xf32>
    %c0_15 = arith.constant 0 : index
    %c0_16 = arith.constant 0 : index
    %47 = vector.load %arg6[%c0_15, %c0_16] : memref<24x1xf32, #tpu.memory_space<vmem>>, vector<24x1xf32>
    %48 = vector.broadcast %47 : vector<24x1xf32> to vector<24x300xf32>
    %49 = arith.addf %46, %48 : vector<24x300xf32>
    %50 = vector.extract_strided_slice %2 {offsets = [0, 8], sizes = [24, 300], strides = [1, 1]} : vector<24x316xf32> to vector<24x300xf32>
    %51 = arith.addf %49, %50 : vector<24x300xf32>
    %c0_17 = arith.constant 0 : index
    %c0_18 = arith.constant 0 : index
    %c0_19 = arith.constant 0 : index
    %52 = vector.load %arg7[%c0_17, %c0_18, %c0_19] : memref<1x24x300xf32, #tpu.memory_space<vmem>>, vector<1x24x300xf32>
    %53 = vector.shape_cast %52 : vector<1x24x300xf32> to vector<24x300xf32>
    %54 = arith.addf %51, %53 : vector<24x300xf32>
    %c0_20 = arith.constant 0 : index
    %c0_21 = arith.constant 0 : index
    %c0_22 = arith.constant 0 : index
    %55 = vector.load %arg8[%c0_20, %c0_21, %c0_22] : memref<1x24x300xf32, #tpu.memory_space<vmem>>, vector<1x24x300xf32>
    %56 = vector.shape_cast %55 : vector<1x24x300xf32> to vector<24x300xf32>
    %57 = vector.shape_cast %54 : vector<24x300xf32> to vector<1x24x300xf32>
    tpu.vector_store %arg8[%c0_20, %c0_21, %c0_22], %57 {strides = array<i32>} : memref<1x24x300xf32, #tpu.memory_space<vmem>>, vector<1x24x300xf32>,
    return
  }
  func.func @transform_0(%arg0: i32, %arg1: i32) -> (i32, i32, i32) {
    %c0_i32 = arith.constant 0 : i32
    %c0_i32_0 = arith.constant 0 : i32
    %c0_i32_1 = arith.constant 0 : i32
    return %arg0, %c0_i32, %c0_i32_0 : i32, i32, i32
  }
  func.func @transform_1(%arg0: i32, %arg1: i32) -> (i32, i32) {
    %c0_i32 = arith.constant 0 : i32
    %c0_i32_0 = arith.constant 0 : i32
    %c0_i32_1 = arith.constant 0 : i32
    return %c0_i32, %c0_i32_0 : i32, i32
  }
  func.func @transform_2(%arg0: i32, %arg1: i32) -> (i32, i32) {
    %c0_i32 = arith.constant 0 : i32
    %c0_i32_0 = arith.constant 0 : i32
    %c0_i32_1 = arith.constant 0 : i32
    return %c0_i32, %c0_i32_0 : i32, i32
  }
  func.func @transform_3(%arg0: i32, %arg1: i32) -> (i32, i32) {
    %c0_i32 = arith.constant 0 : i32
    %c0_i32_0 = arith.constant 0 : i32
    %c0_i32_1 = arith.constant 0 : i32
    return %c0_i32, %c0_i32_0 : i32, i32
  }
  func.func @transform_4(%arg0: i32, %arg1: i32) -> (i32, i32) {
    %c0_i32 = arith.constant 0 : i32
    %c0_i32_0 = arith.constant 0 : i32
    %c0_i32_1 = arith.constant 0 : i32
    return %c0_i32, %c0_i32_0 : i32, i32
  }
  func.func @transform_5(%arg0: i32, %arg1: i32) -> (i32, i32, i32) {
    %c0_i32 = arith.constant 0 : i32
    %c0_i32_0 = arith.constant 0 : i32
    return %arg0, %c0_i32, %arg1 : i32, i32, i32
  }
  func.func @transform_6(%arg0: i32, %arg1: i32) -> (i32, i32, i32) {
    %c0_i32 = arith.constant 0 : i32
    %c0_i32_0 = arith.constant 0 : i32
    return %arg0, %c0_i32, %arg1 : i32, i32, i32
  }
}

</mosaic_0001>

<bundles_post_ra>
// kernel: tpu_custom_call.1
= control target key start
LH: loop header
LB: loop body
LE: loop exit
PB: predicated region body
PF: predicated region fallthrough
CT: control target
= control target key end

     0   :  { %s2318_s0 = inlined_call_operand.hbm [shape: f32[2,24,316], index: 0, kind: input, shape index: {}]   ;;  %s2319_s1 = inlined_call_operand.vmem [shape: bf16[24,120], index: 1, kind: input, shape index: {}]   ;;  %s2320_s2 = inlined_call_operand.vmem [shape: f32[24,1], index: 2, kind: input, shape index: {}]   ;;  %s2321_s3 = inlined_call_operand.vmem [shape: bf16[24,120], index: 3, kind: input, shape index: {}]   ;;  %s2322_s4 = inlined_call_operand.vmem [shape: f32[24,1], index: 4, kind: input, shape index: {}]   ;;  %s2323_s5 = inlined_call_operand.hbm [shape: f32[2,24,300], index: 5, kind: input, shape index: {}]   ;;  %s2324_s6 = inlined_call_operand.hbm [shape: f32[2,24,300], index: 6, kind: output, shape index: {}]  }
   0x1   :  { %2330 = sst [smem:[#allocation12_spill]] %s2318_s0 }
   0x2   :  { %11 = vsyncpa [#allocation3], 0 }
   0x3   :  { %13 = vsyncpa [#allocation3 + $0x1], 0 }
   0x4   :  { %14 = vsyncpa [#allocation6], 0 }
   0x5   :  { %16 = vsyncpa [#allocation6 + $0x1], 0 }
   0x6   :  { %17 = vsyncpa [#allocation4], 0 }
   0x7   :  { %19 = vsyncpa [#allocation4 + $0x1], 0  ;;  %s1795_s21 = smov 0   ;;  %s1797_s22 = smov 0  }
   0x8   :  { %s1799_s23 = smov 0   ;;  %s1801_s24 = smov 0  }
   0x9   :  { %s1803_s25 = smov 0   ;;  %s1805_s26 = smov 0  }
   0xa LB: > { %s1258_s27 = sadd.s32 4294967295, %s1742_s26   ;;  %s1259_s28 = sadd.s32 4294967294, %s1742_s26   ;;  %s1742_s26 = sphi %s1805_s26, %s25_s26   ;;  %s1738_s25 = sphi %s1803_s25, %s2351_s25   ;;  %s1734_s24 = sphi %s1801_s24, %s2350_s24   ;;  %s1730_s23 = sphi %s1799_s23, %s2349_s23   ;;  %s1726_s22 = sphi %s1797_s22, %s2348_s22   ;;  %s1722_s21 = sphi %s1795_s21, %s2347_s21  }
   0xb   : > { %s37_s29 = sadd.s32 1, %s1738_s25  ;;  %s44_s30 = sadd.s32 1, %s1730_s23 }
   0xc   : > { %p39_p0 = scmp.ge.s32.totalorder %s37_s29, 2  ;;  %p51_p1 = scmp.ne.s32.totalorder %s1730_s23, %s1726_s22 }
   0xd   : > { %p52_p2 = scmp.eq.s32.totalorder %s1742_s26, 0  ;;  %p57_p3 = scmp.ne.s32.totalorder %s1726_s22, %s1722_s21 }
   0xe   : > { %s2353_s29 = smov (%p39_p0, %s37_s29), 0  ;;  %p58_p5 = scmp.eq.s32.totalorder %s1258_s27, 0 }
   0xf   : > { %2331 = sst [smem:[#allocation11_spill]] %s2353_s29  ;;  %p1836_p4 = por %p52_p2, %p51_p1 }
  0x10   : > { %s41_s8 = ssub.s32 %s1738_s25, %s2353_s29  ;;  %p195_p6 = scmp.eq.s32.totalorder %s1258_s27, 1 }
  0x11   : > { %p42_p7 = scmp.eq.s32.totalorder %s41_s8, 0  ;;  %p1842_p8 = por %p58_p5, %p57_p3 }
  0x12   : > { %p1846_p9 = por %p195_p6, %p51_p1  ;;  %p201_p10 = scmp.eq.s32.totalorder %s1259_s28, 1 }
  0x13   : > { %s2333_s9 = scalar_select %p1842_p8, 1, 0 }
  0x14   : > { %s2334_s10 = scalar_select %p1846_p9, 1, 0 }
  0x15   : > { %s1851_s11 = scalar_select %p42_p7, %s1730_s23, %s44_s30  }
  0x16   : > { %p1853_p11 = por %p201_p10, %p57_p3  ;;  %p1367_p13 = scmp.lt.s32.totalorder %s1742_s26, 2 }
  0x17   : > { %s1860_s13 = sand.u32 1, %s1730_s23   ;;  %s2325_s15 = smul.u32 1152, %s1738_s25 }
  0x18   : > { %s2335_s12 = scalar_select %p1853_p11, 1, 0 }
  0x19   : > { %s1344_s14 = smul.u32 72, %s1860_s13  ;;  %p1866_p0 = pnand %p1367_p13, %p1836_p4 }
  0x1a   : > { %s2337_s0 = sld [smem:[#allocation12_spill]]  ;;  %s234_s28 = scalar_lea.sflag [#allocation3], %s1860_s13 }
  0x1b   : > { %s237_s20 = scalar_lea.vmem [#allocation2], %s1344_s14  ;;  %p1598_p3 = pneg %p1866_p0 }
  0x1c   : > { %s244_s27 = sshll.u32 %s237_s20, 4  ;;  %s1879_s27 = int_to_ptr.vmem [resolvable:$true] %s244_s27 }
  0x20   : > { %s1875_s19 = scalar_lea.hbm %s2337_s0, %s2325_s15  ;;  %s1601_s17 = scalar_lea.hbm %s2337_s0, 2304 }
  0x21   : > { %s1596_s30 = scalar_lea.hbm %s1875_s19, 1152  ;;  %p1602_p6 = scmp.lt.u32.totalorder %s1875_s19, %s2337_s0 }
  0x22   : > { %p1597_p2 = scmp.ne.s32.totalorder %s1875_s19, %s1596_s30  ;;  %p1603_p7 = scmp.lt.u32.totalorder %s1601_s17, %s1596_s30 }
  0x23   : > { %p1605_p13 = scmp.lt.u32.totalorder %s1596_s30, %s1875_s19 }
  0x24   : > { %p1599_p4 = pnand %p1598_p3, %p1597_p2  ;;  %p1604_p10 = por %p1603_p7, %p1602_p6 }
  0x26   : > { %p1600_p5 = pneg %p1599_p4  ;;  %p1606_p12 = por %p1605_p13, %p1604_p10 }
  0x28   : > { %p1607_p1 = pnand %p1606_p12, %p1600_p5 }
  0x2a   : > { %1610 = shalt.err (!%p1607_p1)
}
  0x2b   : > { %s1611_s20 = scalar_lea.vmem %s1879_s27, 1152  ;;  %s1744_s7 = smov [#allocation2]  }
  0x2c   : > { %p1612_p2 = scmp.ne.s32.totalorder %s1879_s27, %s1611_s20  ;;  %s1616_s8 = sshll.u32 %s1744_s7, 4  ;;  %s1617_s8 = int_to_ptr.vmem [resolvable:$false] %s1616_s8 }
  0x2d   : > { %s1618_s15 = scalar_lea.vmem %s1617_s8, 2304  ;;  %p1619_p9 = scmp.lt.s32.totalorder %s1879_s27, %s1617_s8 }
  0x2e   : > { %p1614_p4 = pnand %p1612_p2, %p1598_p3  ;;  %p1620_p6 = scmp.lt.s32.totalorder %s1618_s15, %s1611_s20 }
  0x30   : > { %p1615_p11 = pneg %p1614_p4  ;;  %p1621_p7 = por %p1620_p6, %p1619_p9 }
  0x32   : > { %p1622_p10 = pnand %p1621_p7, %p1615_p11 }
  0x34   : > { %1625 = shalt.err (!%p1622_p10)
}
  0x35   : > { %s2328_s30 = smov 384   ;;  %s1746_s17 = smov 24  }
  0x36   : > { %1359 = dma.hbm_to_vmem [thread:$0]  (!%p1866_p0), %s1875_s19, 1152, %s1879_s27, %s234_s28, %s2328_s30, %s2328_s30, %s1746_s17  }
  0x37   : > { %p275_p9 = scmp.lt.s32.totalorder %s1742_s26, 3  ;;  %s2338_s18 = smul.u32 1152, %s1738_s25 }
  0x38   : > { %p2339_p11 = scmp.ge.s32.totalorder %s1742_s26, 1  ;;  %s258_s0 = scalar_lea.vmem [#allocation5], %s1344_s14 }
  0x39   : > { %s1919_s8 = scalar_lea.hbm %s2323_s5, %s2338_s18  ;;  %s267_s29 = sshll.u32 %s258_s0, 4  ;;  %s1929_s29 = int_to_ptr.vmem [resolvable:$true] %s267_s29 }
  0x3a   : > { %p1923_p12 = pnand %p2339_p11, %p275_p9  ;;  %s255_s19 = scalar_lea.sflag [#allocation6], %s1860_s13 }
  0x3b   : > { %s1626_s27 = scalar_lea.hbm %s1919_s8, 1152  ;;  %s1631_s20 = scalar_lea.hbm %s2323_s5, 2304 }
  0x3c   : > { %p1627_p1 = scmp.ne.s32.totalorder %s1919_s8, %s1626_s27  ;;  %p1632_p2 = scmp.lt.u32.totalorder %s1919_s8, %s2323_s5 }
  0x3d   : > { %p1633_p4 = scmp.lt.u32.totalorder %s1631_s20, %s1626_s27  ;;  %p1635_p7 = scmp.lt.u32.totalorder %s1626_s27, %s1919_s8 }
  0x3e   : > { %p1629_p5 = pnand %p1627_p1, %p1598_p3 }
  0x3f   : > { %p1634_p6 = por %p1633_p4, %p1632_p2 }
  0x40   : > { %p1630_p13 = pneg %p1629_p5 }
  0x41   : > { %p1636_p10 = por %p1635_p7, %p1634_p6 }
  0x43   : > { %p1637_p9 = pnand %p1636_p10, %p1630_p13 }
  0x45   : > { %1640 = shalt.err (!%p1637_p9)
}
  0x46   : > { %s1641_s0 = scalar_lea.vmem %s1929_s29, 1152  ;;  %s1747_s14 = smov [#allocation5]  }
  0x47   : > { %p1642_p11 = scmp.ne.s32.totalorder %s1929_s29, %s1641_s0  ;;  %s1646_s28 = sshll.u32 %s1747_s14, 4  ;;  %s1647_s28 = int_to_ptr.vmem [resolvable:$false] %s1646_s28 }
  0x48   : > { %s1648_s30 = scalar_lea.vmem %s1647_s28, 2304  ;;  %p1649_p8 = scmp.lt.s32.totalorder %s1929_s29, %s1647_s28 }
  0x49   : > { %p1644_p1 = pnand %p1642_p11, %p1598_p3  ;;  %p1650_p2 = scmp.lt.s32.totalorder %s1648_s30, %s1641_s0 }
  0x4b   : > { %p1645_p5 = pneg %p1644_p1  ;;  %p1651_p4 = por %p1650_p2, %p1649_p8 }
  0x4d   : > { %p1652_p6 = pnand %p1651_p4, %p1645_p5 }
  0x4f   : > { %1655 = shalt.err (!%p1652_p6)
}
  0x50   : > { %s2341_s27 = smov 384   ;;  %279 = sbr.rel (%p1923_p12) target bundleno = 882 (0x372), region = 44 }
  0x51   : > { %1362 = dma.hbm_to_vmem [thread:$0]  (!%p1866_p0), %s1919_s8, 1152, %s1929_s29, %s255_s19, %s2341_s27, %s2341_s27, %s1746_s17  }
  0x52   : > { %s1963_s18 = sand.u32 (!%p1923_p12), 1, %s1726_s22   ;;  %p2342_p8 = scmp.ne.s32.totalorder (!%p1923_p12), %s2333_s9, 0 }
  0x53   : > { %s1966_s20 = smul.u32 (!%p1923_p12), 72, %s1963_s18  ;;  %s282_s16 = scalar_lea.sflag (!%p1923_p12), [#allocation3], %s1963_s18 }
  0x55   : > { %s1970_s7 = scalar_lea.vmem (!%p1923_p12), [#allocation2], %s1966_s20 }
  0x57   : > { %1709 = dma.done.wait (%p2342_p8), %s282_s16, 1152  }
  0x58   : > { %1711 = vsyncadd (%p2342_p8), %s282_s16, 4294966144  ;;  %s291_s29 = scalar_lea.sflag [#allocation6], %s1963_s18  ;;  %s1978_s13 = scalar_lea.vmem [#allocation5], %s1966_s20 }
  0x59   : > { %1713 = dma.done.wait (%p2342_p8), %s291_s29, 1152  }
  0x5a   : > { %1715 = vsyncadd (%p2342_p8), %s291_s29, 4294966144  ;;  %v1985_v0 = vld [vmem:[%s1970_s7 + $0x28] sm:$0xff]  ;;  %v1988_v1 = vld [vmem:[%s1970_s7 + $0x38] sm:$0xff]  ;;  %s1748_s9 = smov 125   ;;  %s1749_s17 = smov 122   ;;  %vm566_vm9 = vcmask 982016  }
  0x5b   : > { %v1991_v2 = vld [vmem:[%s1970_s7 + $0x8] sm:$0xff]  ;;  %vm346_vm0 = vcmp.ge.f32.partialorder %v1985_v0, 0.0  ;;  %vm348_vm1 = vcmp.ge.f32.partialorder %v1988_v1, 0.0  ;;  %v355_v3 = vmul.f32 0.1, %v1985_v0  ;;  %v1998_v5 = vld [vmem:[%s1970_s7 + $0x10] sm:$0xff] }
  0x5c   : > { %v357_v4 = vmul.f32 0.1, %v1988_v1  ;;  %vm342_vm2 = vcmp.ge.f32.partialorder %v1991_v2, 0.0  ;;  %v351_v6 = vmul.f32 0.1, %v1991_v2  ;;  %v2003_v7 = vld [vmem:[%s1970_s7 + $0x18] sm:$0xff] }
  0x5d   : > { %v2006_v8 = vld [vmem:[%s1970_s7 + $0x40] sm:$0xff]  ;;  %v364_v9 = vsel %vm346_vm0, %v1985_v0, %v355_v3  ;;  %vm343_vm3 = vcmp.ge.f32.partialorder %v1998_v5, 0.0  ;;  %v352_v11 = vmul.f32 0.1, %v1998_v5  ;;  %vm344_vm4 = vcmp.ge.f32.partialorder %v2003_v7, 0.0  ;;  %v2033_v22 = vld [vmem:[%s1970_s7 + $0x30] sm:$0xff] }
  0x5e   : > { %v2010_v10 = vsel %vm348_vm1, %v1988_v1, %v357_v4  ;;  %v2015_v12 = vld [vmem:[%s1970_s7] sm:$0xff]  ;;  %v360_v15 = vsel %vm342_vm2, %v1991_v2, %v351_v6  ;;  %vm349_vm5 = vcmp.ge.f32.partialorder %v2006_v8, 0.0  ;;  %v353_v17 = vmul.f32 0.1, %v2003_v7  ;;  %s1750_s8 = smov 119   ;;  %s1751_s15 = smov 116  }
  0x5f   : > { %v2018_v13 = vld [vmem:[%s1970_s7 + $0x20] sm:$0xff]  ;;  %v1440_v14 = vpack.i.bf16 %v2010_v10, %v364_v9  ;;  %v361_v16 = vsel %vm343_vm3, %v1998_v5, %v352_v11  ;;  %v358_v18 = vmul.f32 0.1, %v2006_v8  ;;  %vm341_vm6 = vcmp.ge.f32.partialorder %v2015_v12, 0.0  ;;  %v542_v42 = vld [vmem:[%s2320_s2 + $0x10] sm:$0xff]  ;;  %s1755_s19 = smov 124  }
  0x60   : > { %v1430_v19 = vpack.i.bf16 %v361_v16, %v360_v15  ;;  %vm345_vm7 = vcmp.ge.f32.partialorder %v2018_v13, 0.0  ;;  %v350_v20 = vmul.f32 0.1, %v2015_v12  ;;  %v354_v21 = vmul.f32 0.1, %v2018_v13  ;;  %v2055_v37 = vld [vmem:[%s2319_s1] sm:$0xff]  }
  0x61   : > { %1441 = vrot.lane.b32.xlu1 %v1440_v14, %s1748_s9  ;;  %v362_v23 = vsel %vm344_vm4, %v2003_v7, %v353_v17  ;;  %v367_v24 = vsel %vm349_vm5, %v2006_v8, %v358_v18  ;;  %v356_v29 = vmul.f32 0.1, %v2033_v22  ;;  %vm347_vm8 = vcmp.ge.f32.partialorder %v2033_v22, 0.0  ;;  %1318 = vmatprep.mubr.msk.bf16.mxu1 %vm566_vm9, %v2055_v37  ;;  %v541_v40 = vld [vmem:[%s2320_s2 + $0x8] sm:$0xff]  ;;  %v540_v41 = vld [vmem:[%s2320_s2] sm:$0xff]  ;;  %s1756_s29 = smov 120  }
  0x62   : > { %1431 = vrot.lane.b32.xlu0 %v1430_v19, %s1748_s9  ;;  %v1445_v25 = vpack.i.bf16 %v362_v23, %v367_v24  ;;  %v359_v26 = vsel %vm341_vm6, %v2015_v12, %v350_v20  ;;  %v363_v27 = vsel %vm345_vm7, %v2018_v13, %v354_v21  ;;  %v518_v30 = vpack.c.bf16 %v364_v9, %v361_v16  ;;  %s1133_s28 = scalar_lea.sflag [#allocation4], %s1963_s18  ;;  %p2343_p3 = scmp.ne.s32.totalorder %s2334_s10, 0 }
  0x63   : > { %v1435_v28 = vpack.i.bf16 %v363_v27, %v359_v26  ;;  %v517_v31 = vpack.c.bf16 %v363_v27, %v360_v15  ;;  %v516_v32 = vpack.c.bf16 %v362_v23, %v359_v26  ;;  %v2045_v33 = vsel %vm347_vm8, %v2033_v22, %v356_v29 }
  0x64   : > { %v1460_v34 = vpack.i.bf16 %v362_v23, %v359_v26  ;;  %1302 = vmatprep.subr.bf16.mxu1 %v518_v30  ;;  %v1455_v35 = vpack.i.bf16 %v364_v9, %v363_v27  ;;  %v1465_v36 = vpack.i.bf16 %v367_v24, %v2010_v10  ;;  %v1752_v38 = vmov 0  }
  0x65   : > { %1446 = vrot.lane.b32.xlu1 %v1445_v25, %s1748_s9  ;;  %1303 = vmatpush3.bf16.msra.mxu1 %v518_v30  ;;  %v1505_v39 = vpack.i.bf16 %v2010_v10, %v2045_v33  ;;  %vm395_vm10 = vcmask 1022976   ;;  %vm429_vm11 = vcmask 998400   ;;  %vm463_vm12 = vcmask 973824  }
  0x66   : > { %1436 = vrot.lane.b32.xlu0 %v1435_v28, %s1748_s9  ;;  %583 = vmatprep.subr.bf16.mxu0 %v517_v31  ;;  %vm497_vm13 = vcmask 949248   ;;  %vm573_vm14 = vcmask 1043456  }
  0x67   : > { %584 = vmatpush1.bf16.msra.mxu0 %v516_v32  ;;  %615 = vmatprep.mubr.bf16.mxu0 %v1752_v38 }
  0x68   : > { %1511 = vset.pattern.permute.xlu1 %v1752_v38  ;;  %1510 = vset.pattern.permute.xlu0 %v1752_v38 }
  0x69   : > { %1451 = vrot.lane.b32.xlu1 %v1430_v19, %s1749_s17 }
  0x6a   : > { %389 = vrot.lane.b32.xlu0 %v2045_v33, %s1748_s9 }
  0x6d   : > { %1461 = vrot.lane.b32.xlu1 %v1460_v34, %s1749_s17 }
  0x6e   : > { %1456 = vrot.lane.b32.xlu0 %v1455_v35, %s1749_s17 }
  0x71   : > { %1471 = vrot.lane.b32.xlu1 %v1430_v19, %s1750_s8 }
  0x72   : > { %1466 = vrot.lane.b32.xlu0 %v1465_v36, %s1749_s17 }
  0x75   : > { %1476 = vrot.lane.b32.xlu1 %v1435_v28, %s1750_s8 }
  0x76   : > { %423 = vrot.lane.b32.xlu0 %v2045_v33, %s1749_s17 }
  0x79   : > { %1486 = vrot.lane.b32.xlu1 %v1445_v25, %s1750_s8 }
  0x7a   : > { %1481 = vrot.lane.b32.xlu0 %v1440_v14, %s1750_s8 }
  0x7d   : > { %1491 = vrot.lane.b32.xlu1 %v1430_v19, %s1751_s15 }
  0x7e   : > { %457 = vrot.lane.b32.xlu0 %v2045_v33, %s1750_s8  ;;  %s1753_s8 = smov 126  }
  0x81   : > { %1501 = vrot.lane.b32.xlu1 %v1460_v34, %s1751_s15 }
  0x82   : > { %1496 = vrot.lane.b32.xlu0 %v1455_v35, %s1751_s15 }
  0x85   : > { %495 = vrot.lane.b32.xlu1 %v367_v24, %s1751_s15 }
  0x86   : > { %1506 = vrot.lane.b32.xlu0 %v1505_v39, %s1751_s15  ;;  %s1754_s15 = smov 127  }
  0x89   : > { %550 = vperm.xlu1 %1511, %v541_v40  }
  0x8a   : > { %545 = vperm.xlu0 %1510, %v540_v41  }
  0x8d   : > { %555 = vperm.xlu1 %1511, %v542_v42  }
  0xd3   : > { %v1442_v43 = vpop.permute.xlu1 %1441 }
  0xd4   : > { %v1432_v44 = vpop.permute.xlu0 %1431  ;;  %v1443_v48 = vunpack.i.l.bf16 %v1442_v43  ;;  %v1444_v52 = vunpack.i.h.bf16 %v1442_v43 }
  0xd5   : > { %v1434_v45 = vunpack.i.h.bf16 %v1432_v44  ;;  %v1433_v46 = vunpack.i.l.bf16 %v1432_v44 }
  0xd7   : > { %v1447_v47 = vpop.permute.xlu1 %1446  ;;  %v521_v49 = vpack.c.bf16 %v1434_v45, %v367_v24  ;;  %v397_v51 = vsel %vm395_vm10, %v1433_v46, %v1434_v45 }
  0xd8   : > { %v1448_v50 = vunpack.i.l.bf16 %v1447_v47  ;;  %v1437_v53 = vpop.permute.xlu0 %1436  ;;  %v520_v54 = vpack.c.bf16 %v397_v51, %v2010_v10  ;;  %v1449_v60 = vunpack.i.h.bf16 %v1447_v47 }
  0xd9   : > { %v1439_v56 = vunpack.i.h.bf16 %v1437_v53  ;;  %v1438_v57 = vunpack.i.l.bf16 %v1437_v53  ;;  %1304 = vmatprep.subr.bf16.mxu1 %v521_v49 }
  0xda   : > { %v524_v55 = vpack.c.bf16 %v1448_v50, %v1443_v48  ;;  %585 = vmatprep.subr.bf16.mxu0 %v520_v54  ;;  %1305 = vmatpush3.bf16.msra.mxu1 %v521_v49  ;;  %v401_v59 = vsel %vm395_vm10, %v1444_v52, %v1448_v50 }
  0xdb   : > { %v1452_v58 = vpop.permute.xlu1 %1451  ;;  %v396_v61 = vsel %vm395_vm10, %v1438_v57, %v1433_v46  ;;  %v399_v3 = vsel %vm395_vm10, %v1439_v56, %v1443_v48  ;;  %v398_v14 = vsel %vm395_vm10, %v1449_v60, %v1439_v56 }
  0xdc   : > { %1306 = vmatprep.subr.bf16.mxu1 %v524_v55  ;;  %v390_v62 = vpop.permute.xlu0 %389  ;;  %v519_v63 = vpack.c.bf16 %v396_v61, %v2045_v33  ;;  %v523_v6 = vpack.c.bf16 %v401_v59, %v399_v3  ;;  %v1454_v9 = vunpack.i.h.bf16 %v1452_v58  ;;  %v1453_v10 = vunpack.i.l.bf16 %v1452_v58 }
  0xdd   : > { %v400_v4 = vsel %vm395_vm10, %v390_v62, %v1444_v52 }
  0xde   : > { %586 = vmatpush1.bf16.msra.mxu0 %v519_v63  ;;  %1307 = vmatpush3.bf16.msra.mxu1 %v524_v55  ;;  %v522_v16 = vpack.c.bf16 %v400_v4, %v398_v14  ;;  %v431_v23 = vsel %vm429_vm11, %v1453_v10, %v1454_v9 }
  0xdf   : > { %v1462_v11 = vpop.permute.xlu1 %1461  ;;  %587 = vmatprep.subr.bf16.mxu0 %v523_v6 }
  0xe0   : > { %v1463_v15 = vunpack.i.l.bf16 %v1462_v11  ;;  %v1464_v17 = vunpack.i.h.bf16 %v1462_v11  ;;  %v1457_v18 = vpop.permute.xlu0 %1456 }
  0xe1   : > { %v1459_v19 = vunpack.i.h.bf16 %v1457_v18  ;;  %v1458_v20 = vunpack.i.l.bf16 %v1457_v18 }
  0xe2   : > { %588 = vmatpush1.bf16.msra.mxu0 %v522_v16  ;;  %v430_v24 = vsel %vm429_vm11, %v1463_v15, %v1453_v10 }
  0xe3   : > { %v1472_v21 = vpop.permute.xlu1 %1471  ;;  %v527_v25 = vpack.c.bf16 %v1459_v19, %v1454_v9  ;;  %v433_v28 = vsel %vm429_vm11, %v1458_v20, %v1459_v19  ;;  %v432_v31 = vsel %vm429_vm11, %v1464_v17, %v1458_v20 }
  0xe4   : > { %v1474_v26 = vunpack.i.h.bf16 %v1472_v21  ;;  %v1473_v27 = vunpack.i.l.bf16 %v1472_v21  ;;  %v1467_v29 = vpop.permute.xlu0 %1466  ;;  %v526_v30 = vpack.c.bf16 %v433_v28, %v431_v23  ;;  %v525_v34 = vpack.c.bf16 %v432_v31, %v430_v24 }
  0xe5   : > { %v1469_v32 = vunpack.i.h.bf16 %v1467_v29  ;;  %v1468_v33 = vunpack.i.l.bf16 %v1467_v29  ;;  %1308 = vmatprep.subr.bf16.mxu1 %v527_v25 }
  0xe6   : > { %v465_v35 = vsel %vm463_vm12, %v1473_v27, %v1474_v26  ;;  %589 = vmatprep.subr.bf16.mxu0 %v526_v30  ;;  %1309 = vmatpush3.bf16.msra.mxu1 %v527_v25 }
  0xe7   : > { %v1477_v36 = vpop.permute.xlu1 %1476  ;;  %v530_v39 = vpack.c.bf16 %v1474_v26, %v1469_v32  ;;  %590 = vmatpush1.bf16.msra.mxu0 %v525_v34  ;;  %v435_v41 = vsel %vm429_vm11, %v1468_v33, %v1469_v32 }
  0xe8   : > { %v1478_v40 = vunpack.i.l.bf16 %v1477_v36  ;;  %v424_v42 = vpop.permute.xlu0 %423  ;;  %v529_v43 = vpack.c.bf16 %v465_v35, %v435_v41  ;;  %v1479_v50 = vunpack.i.h.bf16 %v1477_v36  ;;  %v682_v35 = vlaneseq }
  0xe9   : > { %v434_v45 = vsel %vm429_vm11, %v424_v42, %v1468_v33  ;;  %1310 = vmatprep.subr.bf16.mxu1 %v530_v39  ;;  %v1593_v33 = vld [vmem:[%s2319_s1 + $0x8] ss:$0 sps:$4 sm:$0xff]  }
  0xea   : > { %v464_v44 = vsel %vm463_vm12, %v1478_v40, %v1473_v27  ;;  %591 = vmatprep.subr.bf16.mxu0 %v529_v43  ;;  %1311 = vmatpush3.bf16.msra.mxu1 %v530_v39  ;;  %v683_v36 = vand.u32 127, %v682_v35 }
  0xeb   : > { %v528_v46 = vpack.c.bf16 %v464_v44, %v434_v45  ;;  %v1487_v47 = vpop.permute.xlu1 %1486 }
  0xec   : > { %v1488_v48 = vunpack.i.l.bf16 %v1487_v47  ;;  %v1482_v49 = vpop.permute.xlu0 %1481  ;;  %v1489_v51 = vunpack.i.h.bf16 %v1487_v47  ;;  %v685_v39 = vadd.s32 256, %v683_v36  ;;  %v2114_v41 = vadd.s32 4294967294, %v683_v36 }
  0xed   : > { %592 = vmatpush1.bf16.msra.mxu0 %v528_v46  ;;  %v1484_v52 = vunpack.i.h.bf16 %v1482_v49  ;;  %v1483_v53 = vunpack.i.l.bf16 %v1482_v49 }
  0xee   : > { %v466_v59 = vsel %vm463_vm12, %v1489_v51, %v1479_v50  ;;  %v2112_v40 = vadd.s32 4294967294, %v685_v39  ;;  %vm691_vm0 = vcmp.ge.s32.totalorder %v2114_v41, 0 }
  0xef   : > { %v1492_v54 = vpop.permute.xlu1 %1491  ;;  %v533_v55 = vpack.c.bf16 %v1488_v48, %v1483_v53  ;;  %v467_v56 = vsel %vm463_vm12, %v1479_v50, %v1483_v53  ;;  %v469_v58 = vsel %vm463_vm12, %v1484_v52, %v1488_v48 }
  0xf0   : > { %v458_v57 = vpop.permute.xlu0 %457  ;;  %v532_v61 = vpack.c.bf16 %v469_v58, %v467_v56  ;;  %v1494_v62 = vunpack.i.h.bf16 %v1492_v54  ;;  %v1493_v63 = vunpack.i.l.bf16 %v1492_v54  ;;  %vm696_vm15 = vcmp.lt.s32.totalorder %v2112_v40, 300 }
  0xf1   : > { %v468_v60 = vsel %vm463_vm12, %v458_v57, %v1484_v52  ;;  %1312 = vmatprep.subr.bf16.mxu1 %v533_v55  ;;  %vm769_vm12 = vcmask 1039360  }
  0xf2   : > { %v531_v3 = vpack.c.bf16 %v468_v60, %v466_v59  ;;  %1313 = vmatpush3.bf16.msra.mxu1 %v533_v55  ;;  %593 = vmatprep.subr.bf16.mxu0 %v532_v61  ;;  %v499_v17 = vsel %vm497_vm13, %v1493_v63, %v1494_v62 }
  0xf3   : > { %v1502_v4 = vpop.permute.xlu1 %1501 }
  0xf4   : > { %v1504_v6 = vunpack.i.h.bf16 %v1502_v4  ;;  %v1503_v9 = vunpack.i.l.bf16 %v1502_v4  ;;  %v1497_v10 = vpop.permute.xlu0 %1496  ;;  %594 = vmatpush1.bf16.msra.mxu0 %v531_v3 }
  0xf5   : > { %v1499_v11 = vunpack.i.h.bf16 %v1497_v10  ;;  %v1498_v14 = vunpack.i.l.bf16 %v1497_v10 }
  0xf6   : > { %v498_v15 = vsel %vm497_vm13, %v1503_v9, %v1493_v63 }
  0xf7   : > { %v496_v16 = vpop.permute.xlu1 %495  ;;  %v536_v18 = vpack.c.bf16 %v1499_v11, %v1494_v62  ;;  %v501_v20 = vsel %vm497_vm13, %v1498_v14, %v1499_v11  ;;  %v500_v21 = vsel %vm497_vm13, %v1504_v6, %v1498_v14 }
  0xf8   : > { %v539_v19 = vpack.c.bf16 %v496_v16, %v496_v16  ;;  %v1507_v23 = vpop.permute.xlu0 %1506  ;;  %v535_v24 = vpack.c.bf16 %v501_v20, %v499_v17  ;;  %v534_v25 = vpack.c.bf16 %v500_v21, %v498_v15 }
  0xf9   : > { %v1509_v26 = vunpack.i.h.bf16 %v1507_v23  ;;  %v1508_v27 = vunpack.i.l.bf16 %v1507_v23  ;;  %1314 = vmatprep.subr.bf16.mxu1 %v536_v18 }
  0xfa   : > { %595 = vmatprep.subr.bf16.mxu0 %v535_v24  ;;  %1315 = vmatpush3.bf16.msra.mxu1 %v536_v18  ;;  %v581_v29 = vsel %vm573_vm14, %v539_v19, 0 }
  0xfb   : > { %v503_v28 = vsel %vm497_vm13, %v1509_v26, %v496_v16  ;;  %596 = vmatpush1.bf16.msra.mxu0 %v534_v25  ;;  %1342 = vmatprep.subr.msk.bf16.mxu1 %vm573_vm14, %v539_v19  ;;  %v502_v30 = vsel %vm497_vm13, %v1508_v27, %v1509_v26  ;;  %vm803_vm13 = vcmask 1031168  }
  0xfc   : > { %v538_v31 = vpack.c.bf16 %v503_v28, %v503_v28  ;;  %v537_v32 = vpack.c.bf16 %v502_v30, %v502_v30 }
  0xfe   : > { %1267 = vmatprep.subr.msk.bf16.mxu0 %vm573_vm14, %v538_v31  ;;  %1317 = vmatpush3.bf16.msra.mxu1 %v581_v29  ;;  %v575_v34 = vsel %vm573_vm14, %v537_v32, 0 }
  0xff   : > { %598 = vmatpush1.bf16.msra.mxu0 %v575_v34 }
 0x101   : > { %1319 = vmatmul.mubr.msk.bf16.vlgmr.msra.gmra.mrb[0].mxu1 %vm566_vm9, %v1593_v33 }
 0x102   : > { %1268 = vmatmul.mubr.msk.bf16.vlgmr.msra.gmra.mrb[0].mxu0 %vm566_vm9, %v2055_v37 }
 0x103   : > { %625 = vmatprep.mubr.bf16.mxu0 %v1752_v38 }
 0x108   : > { %v551_v52 = vpop.permute.xlu1 %550 }
 0x109   : > { %v546_v42 = vpop.permute.xlu0 %545 }
 0x10a   : > { %1269 = vmatmul.mubr.msk.bf16.gmra.mrb[4].mxu0 %vm566_vm9, %v1593_v33 }
 0x10b   : > { %986 = vmatprep.mubr.bf16.mxu0 %v1752_v38 }
 0x10c   : > { %v556_v10 = vpop.permute.xlu1 %555 }
 0x1d4   : > { %v1320_v43 = vpop.f32.mrb[0].mxu1 }
 0x1d5   : > { %v617_v44 = vpop.f32.mrb[0].mxu0  ;;  %v668_v37 = vpop.f32.mrb[1].mxu1  ;;  %v677_v33 = vadd.f32 %v1320_v43, %v556_v10 }
 0x1d6   : > { %v618_v45 = vadd.f32 %v617_v44, %v546_v42  ;;  %v669_v46 = vadd.f32 %v668_v37, %v546_v42  ;;  %v619_v47 = vpop.f32.mrb[1].mxu0  ;;  %v1321_v48 = vpop.f32.mrb[2].mxu1 }
 0x1d7   : > { %v620_v49 = vadd.f32 %v619_v47, %v546_v42  ;;  %v621_v50 = vpop.f32.mrb[2].mxu0  ;;  %v671_v51 = vpop.f32.mrb[3].mxu1  ;;  %v714_v39 = vsel %vm696_vm15, %v677_v33, 0.0  ;;  %v913_v47 = vld [vmem:[%s2322_s4] sm:$0xff]  ;;  %v914_v48 = vld [vmem:[%s2322_s4 + $0x8] sm:$0xff] }
 0x1d8   : > { %v706_v53 = vsel %vm691_vm0, %v618_v45, 0.0  ;;  %v708_v54 = vsel %vm696_vm15, %v669_v46, 0.0  ;;  %v623_v55 = vpop.f32.mrb[3].mxu0  ;;  %v622_v59 = vadd.f32 %v621_v50, %v551_v52  ;;  %v672_v60 = vadd.f32 %v671_v51, %v551_v52  ;;  %v2157_v45 = vld [vmem:[%s2321_s3] sm:$0xff]  }
 0x1d9   : > { %vm717_vm1 = vcmp.ge.f32.partialorder %v708_v54, 0.0  ;;  %v726_v56 = vmul.f32 0.1, %v708_v54  ;;  %v724_v57 = vmul.f32 0.1, %v706_v53  ;;  %vm716_vm2 = vcmp.ge.f32.partialorder %v620_v49, 0.0  ;;  %1338 = vmatprep.mubr.msk.bf16.mxu1 %vm566_vm9, %v2157_v45 }
 0x1da   : > { %v725_v58 = vmul.f32 0.1, %v620_v49  ;;  %vm715_vm3 = vcmp.ge.f32.partialorder %v706_v53, 0.0  ;;  %v624_v61 = vadd.f32 %v623_v55, %v551_v52  ;;  %v709_v3 = vsel %vm691_vm0, %v622_v59, 0.0 }
 0x1db   : > { %v735_v62 = vsel %vm717_vm1, %v708_v54, %v726_v56  ;;  %vm718_vm4 = vcmp.ge.f32.partialorder %v709_v3, 0.0  ;;  %v727_v4 = vmul.f32 0.1, %v709_v3  ;;  %v711_v6 = vsel %vm696_vm15, %v672_v60, 0.0 }
 0x1dc   : > { %v734_v63 = vsel %vm716_vm2, %v620_v49, %v725_v58  ;;  %vm719_vm5 = vcmp.ge.f32.partialorder %v624_v61, 0.0  ;;  %v733_v11 = vsel %vm715_vm3, %v706_v53, %v724_v57  ;;  %vm720_vm6 = vcmp.ge.f32.partialorder %v711_v6, 0.0  ;;  %v915_v49 = vld [vmem:[%s2322_s4 + $0x10] sm:$0xff] }
 0x1dd   : > { %v627_v9 = vpop.f32.mrb[4].mxu0  ;;  %v729_v14 = vmul.f32 0.1, %v711_v6  ;;  %v728_v15 = vmul.f32 0.1, %v624_v61  ;;  %v736_v17 = vsel %vm718_vm4, %v709_v3, %v727_v4  ;;  %v1517_v19 = vpack.i.bf16 %v735_v62, %v734_v63 }
 0x1de   : > { %v629_v16 = vpop.f32.mrb[5].mxu0  ;;  %v889_v25 = vpack.c.bf16 %v736_v17, %v733_v11  ;;  %v628_v26 = vadd.f32 %v627_v9, %v556_v10  ;;  %v1547_v34 = vpack.i.bf16 %v736_v17, %v733_v11  ;;  %v732_v43 = vmul.f32 0.1, %v714_v39 }
 0x1df   : > { %v630_v18 = vadd.f32 %v629_v16, %v556_v10  ;;  %v631_v20 = vpop.f32.mrb[6].mxu0  ;;  %v738_v21 = vsel %vm720_vm6, %v711_v6, %v729_v14  ;;  %v737_v23 = vsel %vm719_vm5, %v624_v61, %v728_v15  ;;  %1518 = vrot.lane.b32.xlu1 %v1517_v19, %s1753_s8  ;;  %1513 = vrot.lane.b32.xlu0 %v1517_v19, %s1754_s15  ;;  %vm723_vm11 = vcmp.ge.f32.partialorder %v714_v39, 0.0 }
 0x1e0   : > { %v632_v24 = vpop.f32.mrb[7].mxu0  ;;  %v890_v28 = vpack.c.bf16 %v737_v23, %v734_v63  ;;  %v891_v29 = vpack.c.bf16 %v738_v21, %v735_v62  ;;  %v1542_v30 = vpack.i.bf16 %v738_v21, %v737_v23  ;;  %v1532_v32 = vpack.i.bf16 %v737_v23, %v733_v11 }
 0x1e1   : > { %vm722_vm7 = vcmp.ge.f32.partialorder %v630_v18, 0.0  ;;  %v731_v27 = vmul.f32 0.1, %v630_v18  ;;  %v712_v35 = vsel %vm691_vm0, %v628_v26, 0.0  ;;  %v741_v41 = vsel %vm723_vm11, %v714_v39, %v732_v43 }
 0x1e2   : > { %954 = vmatprep.subr.bf16.mxu0 %v890_v28  ;;  %1322 = vmatprep.subr.bf16.mxu1 %v891_v29  ;;  %v730_v42 = vmul.f32 0.1, %v712_v35  ;;  %vm721_vm8 = vcmp.ge.f32.partialorder %v712_v35, 0.0  ;;  %v1537_v40 = vpack.i.bf16 %v736_v17, %v741_v41  ;;  %vm870_vm15 = vcmask 1014784  }
 0x1e3   : > { %v2128_v31 = vsel %vm722_vm7, %v630_v18, %v731_v27  ;;  %955 = vmatpush1.bf16.msra.mxu0 %v889_v25  ;;  %1323 = vmatpush3.bf16.msra.mxu1 %v891_v29 }
 0x1e4   : > { %1523 = vrot.lane.b32.xlu1 %v1517_v19, %s1748_s9  ;;  %1543 = vrot.lane.b32.xlu0 %v1542_v30, %s1753_s8  ;;  %v1562_v36 = vpack.i.bf16 %v2128_v31, %v738_v21  ;;  %v2138_v44 = vsel %vm721_vm8, %v712_v35, %v730_v42  ;;  %v1567_v37 = vpack.i.bf16 %v741_v41, %v2128_v31 }
 0x1e5   : > { %v1587_v46 = vpack.i.bf16 %v2128_v31, %v2138_v44 }
 0x1e8   : > { %1528 = vrot.lane.b32.xlu1 %v1517_v19, %s1755_s19  ;;  %1563 = vrot.lane.b32.xlu0 %v1562_v36, %s1754_s15 }
 0x1ec   : > { %763 = vrot.lane.b32.xlu0 %v2138_v44, %s1754_s15  ;;  %1533 = vrot.lane.b32.xlu1 %v1532_v32, %s1754_s15 }
 0x1f0   : > { %1568 = vrot.lane.b32.xlu0 %v1567_v37, %s1753_s8  ;;  %1538 = vrot.lane.b32.xlu1 %v1537_v40, %s1754_s15  ;;  %s2242_s15 = scalar_lea.vmem [#allocation7], %s1966_s20  ;;  %s1349_s20 = smul.u32 1152, %s1734_s24 }
 0x1f2   : > { %s2265_s24 = scalar_lea.hbm %s2324_s6, %s1349_s20 }
 0x1f4   : > { %797 = vrot.lane.b32.xlu0 %v2138_v44, %s1753_s8  ;;  %1548 = vrot.lane.b32.xlu1 %v1547_v34, %s1753_s8 }
 0x1f8   : > { %1573 = vrot.lane.b32.xlu0 %v1562_v36, %s1748_s9  ;;  %1553 = vrot.lane.b32.xlu1 %v1532_v32, %s1748_s9 }
 0x1fc   : > { %831 = vrot.lane.b32.xlu0 %v2138_v44, %s1748_s9  ;;  %1558 = vrot.lane.b32.xlu1 %v1537_v40, %s1748_s9 }
 0x200   : > { %1578 = vrot.lane.b32.xlu0 %v1542_v30, %s1755_s19  ;;  %1583 = vrot.lane.b32.xlu1 %v1547_v34, %s1755_s19 }
 0x204   : > { %1588 = vrot.lane.b32.xlu0 %v1587_v46, %s1755_s19  ;;  %868 = vrot.lane.b32.xlu1 %v741_v41, %s1755_s19  ;;  %s1148_s19 = sshll.u32 %s2242_s15, 4  ;;  %s2267_s19 = int_to_ptr.vmem [resolvable:$true] %s1148_s19 }
 0x205   : > { %s1656_s30 = scalar_lea.vmem %s2267_s19, 1152 }
 0x206   : > { %p1657_p0 = scmp.ne.s32.totalorder %s2267_s19, %s1656_s30 }
 0x208   : > { %918 = vperm.xlu0 %1510, %v913_v47   ;;  %923 = vperm.xlu1 %1511, %v914_v48   ;;  %p1658_p12 = pnand %p1657_p0, %p2343_p3 }
 0x20a   : > { %p1659_p13 = pneg %p1658_p12 }
 0x20c   : > { %928 = vperm.xlu0 %1510, %v915_v49   ;;  %1062 = vrot.lane.b32.xlu1 %v2015_v12, %s1756_s29 }
 0x210   : > { %1066 = vrot.lane.b32.xlu1 %v1998_v5, %s1756_s29  ;;  %1064 = vrot.lane.b32.xlu0 %v1991_v2, %s1756_s29 }
 0x214   : > { %1070 = vrot.lane.b32.xlu1 %v2018_v13, %s1756_s29  ;;  %1068 = vrot.lane.b32.xlu0 %v2003_v7, %s1756_s29 }
 0x218   : > { %1074 = vrot.lane.b32.xlu1 %v2033_v22, %s1756_s29  ;;  %1072 = vrot.lane.b32.xlu0 %v1985_v0, %s1756_s29 }
 0x21c   : > { %1078 = vrot.lane.b32.xlu1 %v2006_v8, %s1756_s29  ;;  %1076 = vrot.lane.b32.xlu0 %v1988_v1, %s1756_s29 }
 0x251   : > { %v1519_v50 = vpop.permute.xlu1 %1518  ;;  %v1514_v51 = vpop.permute.xlu0 %1513 }
 0x252   : > { %v1516_v12 = vunpack.i.h.bf16 %v1514_v51  ;;  %v1515_v52 = vunpack.i.l.bf16 %v1514_v51  ;;  %v1521_v58 = vunpack.i.h.bf16 %v1519_v50  ;;  %v1520_v60 = vunpack.i.l.bf16 %v1519_v50 }
 0x254   : > { %v894_v5 = vpack.c.bf16 %v1516_v12, %v741_v41  ;;  %v771_v2 = vsel %vm769_vm12, %v1515_v52, %v1516_v12  ;;  %v805_v26 = vsel %vm803_vm13, %v1520_v60, %v1521_v58 }
 0x255   : > { %v893_v13 = vpack.c.bf16 %v771_v2, %v2128_v31 }
 0x256   : > { %v2183_v53 = vpop.permute.xlu1 %1523  ;;  %v1544_v7 = vpop.permute.xlu0 %1543  ;;  %1324 = vmatprep.subr.bf16.mxu1 %v894_v5 }
 0x257   : > { %956 = vmatprep.subr.bf16.mxu0 %v893_v13  ;;  %1325 = vmatpush3.bf16.msra.mxu1 %v894_v5  ;;  %v1546_v55 = vunpack.i.h.bf16 %v1544_v7  ;;  %v1545_v56 = vunpack.i.l.bf16 %v1544_v7  ;;  %v1526_v20 = vunpack.i.h.bf16 %v2183_v53  ;;  %v1525_v27 = vunpack.i.l.bf16 %v2183_v53 }
 0x259   : > { %v807_v15 = vsel %vm803_vm13, %v1545_v56, %v1546_v55  ;;  %v900_v28 = vpack.c.bf16 %v1546_v55, %v1521_v58 }
 0x25a   : > { %v2185_v0 = vpop.permute.xlu1 %1528  ;;  %v1564_v8 = vpop.permute.xlu0 %1563  ;;  %v899_v31 = vpack.c.bf16 %v807_v15, %v805_v26 }
 0x25b   : > { %v1566_v61 = vunpack.i.h.bf16 %v1564_v8  ;;  %v1565_v62 = vunpack.i.l.bf16 %v1564_v8  ;;  %v1531_v5 = vunpack.i.h.bf16 %v2185_v0  ;;  %v1530_v2 = vunpack.i.l.bf16 %v2185_v0 }
 0x25e   : > { %v764_v1 = vpop.permute.xlu0 %763  ;;  %v1534_v22 = vpop.permute.xlu1 %1533 }
 0x25f   : > { %v1535_v54 = vunpack.i.l.bf16 %v1534_v22  ;;  %v1536_v57 = vunpack.i.h.bf16 %v1534_v22  ;;  %v774_v10 = vsel %vm769_vm12, %v764_v1, %v1566_v61 }
 0x261   : > { %v770_v59 = vsel %vm769_vm12, %v1535_v54, %v1515_v52  ;;  %v773_v14 = vsel %vm769_vm12, %v1536_v57, %v1565_v62 }
 0x262   : > { %v892_v63 = vpack.c.bf16 %v770_v59, %v2138_v44  ;;  %v1569_v3 = vpop.permute.xlu0 %1568  ;;  %v1539_v4 = vpop.permute.xlu1 %1538  ;;  %v838_v44 = vsel %vm395_vm10, %v1525_v27, %v1526_v20 }
 0x263   : > { %v1541_v6 = vunpack.i.h.bf16 %v1539_v4  ;;  %v1540_v9 = vunpack.i.l.bf16 %v1539_v4  ;;  %v1571_v11 = vunpack.i.h.bf16 %v1569_v3  ;;  %v1570_v16 = vunpack.i.l.bf16 %v1569_v3 }
 0x264   : > { %957 = vmatpush1.bf16.msra.mxu0 %v892_v63 }
 0x265   : > { %v772_v17 = vsel %vm769_vm12, %v1541_v6, %v1536_v57  ;;  %v897_v18 = vpack.c.bf16 %v1540_v9, %v1565_v62  ;;  %v775_v19 = vsel %vm769_vm12, %v1566_v61, %v1540_v9  ;;  %v809_v34 = vsel %vm803_vm13, %v1570_v16, %v1571_v11 }
 0x266   : > { %v895_v21 = vpack.c.bf16 %v774_v10, %v772_v17  ;;  %v798_v23 = vpop.permute.xlu0 %797  ;;  %v1549_v24 = vpop.permute.xlu1 %1548  ;;  %v896_v25 = vpack.c.bf16 %v775_v19, %v773_v14  ;;  %v903_v42 = vpack.c.bf16 %v1526_v20, %v1571_v11  ;;  %v902_v40 = vpack.c.bf16 %v838_v44, %v809_v34 }
 0x267   : > { %v1551_v29 = vunpack.i.h.bf16 %v1549_v24  ;;  %v1550_v30 = vunpack.i.l.bf16 %v1549_v24  ;;  %1326 = vmatprep.subr.bf16.mxu1 %v897_v18  ;;  %v808_v46 = vsel %vm803_vm13, %v798_v23, %v1570_v16 }
 0x268   : > { %958 = vmatprep.subr.bf16.mxu0 %v896_v25  ;;  %1327 = vmatpush3.bf16.msra.mxu1 %v897_v18 }
 0x269   : > { %v806_v32 = vsel %vm803_vm13, %v1551_v29, %v1545_v56  ;;  %v804_v33 = vsel %vm803_vm13, %v1550_v30, %v1520_v60  ;;  %959 = vmatpush1.bf16.msra.mxu0 %v895_v21  ;;  %1328 = vmatprep.subr.bf16.mxu1 %v900_v28  ;;  %v872_v60 = vsel %vm870_vm15, %v1530_v2, %v1531_v5  ;;  %v1595_v21 = vld [vmem:[%s2321_s3 + $0x8] ss:$0 sps:$4 sm:$0xff]  }
 0x26a   : > { %v898_v35 = vpack.c.bf16 %v806_v32, %v804_v33  ;;  %v1574_v36 = vpop.permute.xlu0 %1573  ;;  %v1554_v39 = vpop.permute.xlu1 %1553  ;;  %960 = vmatprep.subr.bf16.mxu0 %v899_v31 }
 0x26b   : > { %v1555_v43 = vunpack.i.l.bf16 %v1554_v39  ;;  %v1575_v41 = vunpack.i.l.bf16 %v1574_v36  ;;  %v1556_v37 = vunpack.i.h.bf16 %v1554_v39  ;;  %v1576_v51 = vunpack.i.h.bf16 %v1574_v36 }
 0x26c   : > { %1329 = vmatpush3.bf16.msra.mxu1 %v900_v28 }
 0x26d   : > { %v837_v47 = vsel %vm395_vm10, %v1555_v43, %v1525_v27  ;;  %961 = vmatpush1.bf16.msra.mxu0 %v898_v35  ;;  %1330 = vmatprep.subr.bf16.mxu1 %v903_v42  ;;  %v840_v13 = vsel %vm395_vm10, %v1556_v37, %v1575_v41 }
 0x26e   : > { %v901_v48 = vpack.c.bf16 %v837_v47, %v808_v46  ;;  %v832_v49 = vpop.permute.xlu0 %831  ;;  %v1559_v50 = vpop.permute.xlu1 %1558  ;;  %962 = vmatprep.subr.bf16.mxu0 %v902_v40  ;;  %v1104_v47 = vld [vmem:[%s1978_s13] sm:$0xff] }
 0x26f   : > { %v1561_v12 = vunpack.i.h.bf16 %v1559_v50  ;;  %v1560_v52 = vunpack.i.l.bf16 %v1559_v50  ;;  %v841_v53 = vsel %vm395_vm10, %v832_v49, %v1576_v51 }
 0x270   : > { %1331 = vmatpush3.bf16.msra.mxu1 %v903_v42 }
 0x271   : > { %v839_v7 = vsel %vm395_vm10, %v1561_v12, %v1556_v37  ;;  %v906_v8 = vpack.c.bf16 %v1560_v52, %v1575_v41  ;;  %963 = vmatpush1.bf16.msra.mxu0 %v901_v48  ;;  %v842_v1 = vsel %vm395_vm10, %v1576_v51, %v1560_v52  ;;  %v1112_v41 = vld [vmem:[%s1978_s13 + $0x40] sm:$0xff]  ;;  %v1106_v48 = vld [vmem:[%s1978_s13 + $0x10] sm:$0xff]  ;;  %vm1124_vm10 = vcmask 359424  }
 0x272   : > { %v904_v22 = vpack.c.bf16 %v841_v53, %v839_v7  ;;  %v1579_v54 = vpop.permute.xlu0 %1578  ;;  %v1584_v55 = vpop.permute.xlu1 %1583  ;;  %v905_v56 = vpack.c.bf16 %v842_v1, %v840_v13 }
 0x273   : > { %v1581_v57 = vunpack.i.h.bf16 %v1579_v54  ;;  %v1580_v58 = vunpack.i.l.bf16 %v1579_v54  ;;  %v1586_v59 = vunpack.i.h.bf16 %v1584_v55  ;;  %v1585_v0 = vunpack.i.l.bf16 %v1584_v55  ;;  %1332 = vmatprep.subr.bf16.mxu1 %v906_v8  ;;  %v1107_v54 = vld [vmem:[%s1978_s13 + $0x18] sm:$0xff]  ;;  %v1109_v55 = vld [vmem:[%s1978_s13 + $0x28] sm:$0xff] }
 0x274   : > { %964 = vmatprep.subr.bf16.mxu0 %v905_v56  ;;  %1333 = vmatpush3.bf16.msra.mxu1 %v906_v8 }
 0x275   : > { %v909_v61 = vpack.c.bf16 %v1581_v57, %v1531_v5  ;;  %v873_v62 = vsel %vm870_vm15, %v1586_v59, %v1580_v58  ;;  %v871_v63 = vsel %vm870_vm15, %v1585_v0, %v1530_v2  ;;  %965 = vmatpush1.bf16.msra.mxu0 %v904_v22  ;;  %v874_v3 = vsel %vm870_vm15, %v1580_v58, %v1581_v57  ;;  %v1105_v2 = vld [vmem:[%s1978_s13 + $0x8] sm:$0xff] }
 0x276   : > { %v907_v4 = vpack.c.bf16 %v873_v62, %v871_v63  ;;  %v1589_v6 = vpop.permute.xlu0 %1588  ;;  %v869_v9 = vpop.permute.xlu1 %868  ;;  %v908_v10 = vpack.c.bf16 %v874_v3, %v872_v60  ;;  %v1108_v60 = vld [vmem:[%s1978_s13 + $0x20] sm:$0xff] }
 0x277   : > { %v1591_v11 = vunpack.i.h.bf16 %v1589_v6  ;;  %v1590_v14 = vunpack.i.l.bf16 %v1589_v6  ;;  %v912_v15 = vpack.c.bf16 %v869_v9, %v869_v9  ;;  %1334 = vmatprep.subr.bf16.mxu1 %v909_v61 }
 0x278   : > { %966 = vmatprep.subr.bf16.mxu0 %v908_v10  ;;  %1335 = vmatpush3.bf16.msra.mxu1 %v909_v61 }
 0x279   : > { %v876_v16 = vsel %vm870_vm15, %v1591_v11, %v869_v9  ;;  %967 = vmatpush1.bf16.msra.mxu0 %v907_v4  ;;  %1343 = vmatprep.subr.msk.bf16.mxu1 %vm573_vm14, %v912_v15  ;;  %v875_v17 = vsel %vm870_vm15, %v1590_v14, %v1591_v11  ;;  %v952_v20 = vsel %vm573_vm14, %v912_v15, 0 }
 0x27a   : > { %v911_v18 = vpack.c.bf16 %v876_v16, %v876_v16  ;;  %v910_v19 = vpack.c.bf16 %v875_v17, %v875_v17  ;;  %v1110_v16 = vld [vmem:[%s1978_s13 + $0x30] sm:$0xff] }
 0x27c   : > { %1274 = vmatprep.subr.msk.bf16.mxu0 %vm573_vm14, %v911_v18  ;;  %1337 = vmatpush3.bf16.msra.mxu1 %v952_v20  ;;  %v946_v23 = vsel %vm573_vm14, %v910_v19, 0  ;;  %v1111_v20 = vld [vmem:[%s1978_s13 + $0x38] sm:$0xff]  ;;  %s1757_s13 = smov [#allocation7]  }
 0x27d   : > { %969 = vmatpush1.bf16.msra.mxu0 %v946_v23  ;;  %s1660_s9 = sshll.u32 %s1757_s13, 4  ;;  %s1661_s9 = int_to_ptr.vmem [resolvable:$false] %s1660_s9 }
 0x27e   : > { %s1662_s27 = scalar_lea.vmem %s1661_s9, 2304  ;;  %p1663_p7 = scmp.lt.s32.totalorder %s2267_s19, %s1661_s9 }
 0x27f   : > { %1339 = vmatmul.mubr.msk.bf16.vlgmr.msra.gmra.mrb[4].mxu1 %vm566_vm9, %v1595_v21  ;;  %p1664_p10 = scmp.lt.s32.totalorder %s1662_s27, %s1656_s30 }
 0x280   : > { %1275 = vmatmul.mubr.msk.bf16.vlgmr.msra.gmra.mrb[8].mxu0 %vm566_vm9, %v2157_v45 }
 0x281   : > { %996 = vmatprep.mubr.bf16.mxu0 %v1752_v38  ;;  %p1665_p9 = por %p1664_p10, %p1663_p7 }
 0x283   : > { %p1666_p11 = pnand %p1665_p9, %p1659_p13 }
 0x287   : > { %v924_v24 = vpop.permute.xlu1 %923  ;;  %v919_v26 = vpop.permute.xlu0 %918 }
 0x288   : > { %1276 = vmatmul.mubr.msk.bf16.gmra.mrb[12].mxu0 %vm566_vm9, %v1595_v21 }
 0x28b   : > { %v1063_v25 = vpop.permute.xlu1 %1062  ;;  %v2227_v28 = vpop.permute.xlu0 %928 }
 0x28f   : > { %v1067_v27 = vpop.permute.xlu1 %1066  ;;  %v1065_v30 = vpop.permute.xlu0 %1064 }
 0x290   : > { %v1080_v39 = vsel %vm566_vm9, %v1063_v25, %v1065_v30  ;;  %v1081_v42 = vsel %vm566_vm9, %v1065_v30, %v1067_v27 }
 0x293   : > { %v1071_v29 = vpop.permute.xlu1 %1070  ;;  %v1069_v32 = vpop.permute.xlu0 %1068 }
 0x294   : > { %v1082_v46 = vsel %vm566_vm9, %v1069_v32, %v1071_v29 }
 0x297   : > { %v1075_v31 = vpop.permute.xlu1 %1074  ;;  %v1073_v45 = vpop.permute.xlu0 %1072 }
 0x298   : > { %v1083_v22 = vsel %vm566_vm9, %v1071_v29, %v1073_v45 }
 0x29b   : > { %v1079_v33 = vpop.permute.xlu1 %1078  ;;  %v1077_v4 = vpop.permute.xlu0 %1076 }
 0x29c   : > { %v1085_v10 = vsel %vm566_vm9, %v1077_v4, %v1079_v33  ;;  %v1084_v15 = vsel %vm566_vm9, %v1075_v31, %v1077_v4 }
 0x352   : > { %v1340_v34 = vpop.f32.mrb[4].mxu1 }
 0x353   : > { %v1048_v38 = vadd.f32 %v1340_v34, %v2227_v28  ;;  %v988_v35 = vpop.f32.mrb[8].mxu0  ;;  %v1039_v36 = vpop.f32.mrb[5].mxu1 }
 0x354   : > { %v989_v43 = vadd.f32 %v988_v35, %v919_v26  ;;  %v1040_v44 = vadd.f32 %v1039_v36, %v919_v26  ;;  %v990_v37 = vpop.f32.mrb[9].mxu0  ;;  %v1341_v40 = vpop.f32.mrb[6].mxu1 }
 0x355   : > { %v1103_v49 = vadd.f32 %v1079_v33, %v1048_v38  ;;  %v991_v50 = vadd.f32 %v990_v37, %v919_v26  ;;  %v992_v51 = vpop.f32.mrb[10].mxu0  ;;  %v1042_v12 = vpop.f32.mrb[7].mxu1 }
 0x356   : > { %v1095_v52 = vadd.f32 %v1080_v39, %v989_v43  ;;  %v1097_v5 = vadd.f32 %v1067_v27, %v1040_v44  ;;  %v993_v13 = vadd.f32 %v992_v51, %v924_v24  ;;  %v1043_v53 = vadd.f32 %v1042_v12, %v924_v24  ;;  %v994_v7 = vpop.f32.mrb[11].mxu0 }
 0x357   : > { %v1121_v8 = vadd.f32 %v1112_v41, %v1103_v49  ;;  %v1096_v1 = vadd.f32 %v1081_v42, %v991_v50  ;;  %v995_v56 = vadd.f32 %v994_v7, %v924_v24 }
 0x358   : > { %v1113_v57 = vadd.f32 %v1104_v47, %v1095_v52  ;;  %v1115_v58 = vadd.f32 %v1106_v48, %v1097_v5  ;;  %v1098_v59 = vadd.f32 %v1082_v46, %v993_v13  ;;  %v1100_v0 = vadd.f32 %v1073_v45, %v1043_v53 }
 0x359   : > { %1131 = vst.msk [vmem:[%s2242_s15 + $0x40] sm:$0xff] %vm1124_vm10, %v1121_v8  ;;  %v1114_v61 = vadd.f32 %v1105_v2, %v1096_v1  ;;  %v1099_v62 = vadd.f32 %v1083_v22, %v995_v56 }
 0x35a   : > { %1122 = vst [vmem:[%s2242_s15] sm:$0xff] %v1113_v57  ;;  %1125 = vst.msk [vmem:[%s2242_s15 + $0x10] sm:$0xff] %vm1124_vm10, %v1115_v58  ;;  %v1116_v63 = vadd.f32 %v1107_v54, %v1098_v59  ;;  %v1118_v3 = vadd.f32 %v1109_v55, %v1100_v0 }
 0x35b   : > { %1123 = vst [vmem:[%s2242_s15 + $0x8] sm:$0xff] %v1114_v61  ;;  %v1117_v6 = vadd.f32 %v1108_v60, %v1099_v62  ;;  %v998_v9 = vpop.f32.mrb[12].mxu0 }
 0x35c   : > { %1126 = vst [vmem:[%s2242_s15 + $0x18] sm:$0xff] %v1116_v63  ;;  %1128 = vst.msk [vmem:[%s2242_s15 + $0x28] sm:$0xff] %vm1124_vm10, %v1118_v3  ;;  %v999_v11 = vadd.f32 %v998_v9, %v2227_v28  ;;  %v1000_v14 = vpop.f32.mrb[13].mxu0 }
 0x35d   : > { %1127 = vst [vmem:[%s2242_s15 + $0x20] sm:$0xff] %v1117_v6  ;;  %v1001_v17 = vadd.f32 %v1000_v14, %v2227_v28  ;;  %v1002_v18 = vpop.f32.mrb[14].mxu0 }
 0x35e   : > { %v1101_v19 = vadd.f32 %v1084_v15, %v999_v11  ;;  %v1003_v21 = vpop.f32.mrb[15].mxu0 }
 0x35f   : > { %v1102_v23 = vadd.f32 %v1085_v10, %v1001_v17 }
 0x360   : > { %v1119_v24 = vadd.f32 %v1110_v16, %v1101_v19 }
 0x361   : > { %v1120_v25 = vadd.f32 %v1111_v20, %v1102_v23 }
 0x362   : > { %1129 = vst [vmem:[%s2242_s15 + $0x30] sm:$0xff] %v1119_v24 }
 0x363   : > { %1130 = vst [vmem:[%s2242_s15 + $0x38] sm:$0xff] %v1120_v25 }
 0x364   : > { %1669 = shalt.err (!%p1666_p11)
}
 0x365   : > { %s1670_s16 = scalar_lea.hbm %s2265_s24, 1152  ;;  %s1674_s17 = scalar_lea.hbm %s2324_s6, 2304 }
 0x366   : > { %p1671_p1 = scmp.ne.s32.totalorder %s2265_s24, %s1670_s16  ;;  %p1675_p4 = scmp.lt.u32.totalorder %s2265_s24, %s2324_s6 }
 0x367   : > { %p1676_p6 = scmp.lt.u32.totalorder %s1674_s17, %s1670_s16  ;;  %p1678_p0 = scmp.lt.u32.totalorder %s1670_s16, %s2265_s24 }
 0x368   : > { %p1672_p5 = pnand %p1671_p1, %p2343_p3 }
 0x369   : > { %p1677_p8 = por %p1676_p6, %p1675_p4 }
 0x36a   : > { %p1673_p2 = pneg %p1672_p5 }
 0x36b   : > { %p1679_p12 = por %p1678_p0, %p1677_p8 }
 0x36d   : > { %p1680_p13 = pnand %p1679_p12, %p1673_p2 }
 0x36f   : > { %1683 = shalt.err (!%p1680_p13)
}
 0x370   : > { %s1758_s20 = smov 384   ;;  %s1759_s0 = smov 24  }
 0x371   : > { %1354 = dma.vmem_to_hbm [thread:$0]  (%p2343_p3), %s2267_s19, 1152, %s2265_s24, %s1133_s28, %s1758_s20, %s1758_s20, %s1759_s0  }
 0x372 PF: > { %s1163_s14 = sand.u32 1, %s1722_s21   ;;  %p2344_p7 = scmp.ne.s32.totalorder %s2335_s12, 0 }
 0x373   : > { %p2345_p10 = scmp.ge.s32.totalorder %s1742_s26, 2  ;;  %s1164_s30 = scalar_lea.sflag [#allocation4], %s1163_s14 }
 0x375   : > { %p1364_p9 = pnand %p2345_p10, %p2344_p7 }
 0x377   : > { %1717 = dma.done.wait (!%p1364_p9), %s1164_s30, 1152  }
 0x378   : > { %1719 = vsyncadd (!%p1364_p9), %s1164_s30, 4294966144  ;;  %s25_s26 = sadd.s32 1, %s1742_s26   ;;  %s2346_s10 = sld [smem:[#allocation11_spill]] }
 0x379   : > { %p22_p11 = scmp.ge.s32.totalorder %s25_s26, 4   ;;  %s2347_s21 = smov %s1726_s22 }
 0x37a   : > { %s2348_s22 = smov %s1730_s23  ;;  %s2349_s23 = smov %s1851_s11 }
 0x37b   : > { %s2350_s24 = smov %s1738_s25  ;;  %24 = sbr.rel (!%p22_p11) target bundleno = 10 (0xa), region = 102 }
 0x37e   : > { %s2351_s25 = smov %s2346_s10 }
 0x382   :  { %1169 = vsyncpa [#allocation3], 1 }
 0x383   :  { %1171 = vsyncpa [#allocation3 + $0x1], 1 }
 0x384   :  { %1172 = vsyncpa [#allocation6], 1 }
 0x385   :  { %1174 = vsyncpa [#allocation6 + $0x1], 1 }
 0x386   :  { %1175 = vsyncpa [#allocation4], 1 }
 0x387   :  { %1177 = vsyncpa [#allocation4 + $0x1], 1 }

</bundles_post_ra>
